<compile_context>
chip_gen: v7x
topology: tpu7x:2x2x1
jax: 0.10.0
libtpu: 0.0.40
codegen_flags: <defaults>
</compile_context>

<pallas_src>
import functools

import jax
import jax.numpy as jnp
from jax import lax
from jax.experimental import pallas as pl
from jax.experimental.pallas import tpu as pltpu


# ----------------------------------------------------------------------------- params
class Params:
    word_vocab_size = 64
    char_vocab_size = 24
    word_embed_size = 32
    char_embed_size = 8
    max_word_len = 6
    # TDNN kernels: (out_features, kernel_width)
    tdnn_kernels = [(16, 3)]
    sum_depth = 16                       # sum of TDNN out_features
    encoder_rnn_size = 32
    encoder_num_layers = 1
    latent_variable_size = 16
    decoder_dilations = [1, 2, 4]
    # decoder kernels: (out_channels, in_channels, width); in of first = latent + word_embed
    decoder_kernels = [(32, 16 + 32, 3), (40, 32, 3), (48, 40, 3)]


VMEM = pl.BlockSpec(memory_space=pltpu.MemorySpace.VMEM)


# ----------------------------------------------------------------------------- fused kernel
def _make_rvae_kernel(p, layout, Bp, B, T_enc, Td):
    H = p.encoder_rnn_size
    Ec = p.char_embed_size
    L = p.max_word_len
    Lat = p.latent_variable_size
    cin0 = p.decoder_kernels[0][1]
    n_tdnn = len(p.tdnn_kernels)
    offs = layout["offs"]
    v_pad = layout["v_pad"]
    f32 = jnp.float32

    def kernel(word2_ref, xc2_ref, dec_ref, eps_ref, wblob_ref, logits_ref):
        def W(name):
            r0, nr, nc = offs[name]
            return wblob_ref[r0:r0 + nr, 0:nc]

        # ---------------- char-level TDNN: doubled (fwd||bwd time) block matmul -------------
        xc2 = xc2_ref[...]                                                   # [T*Bp, 2*L*Ec]
        mks = []
        for idx, (cout, kw) in enumerate(p.tdnn_kernels):
            l_out = L - kw + 1
            width = l_out * 2 * cout
            pos = jnp.maximum(
                jnp.dot(xc2, W(f"tdnn{idx}"), preferred_element_type=f32), 0.0)
            m = pos
            for q in range(1, l_out):                                        # max over positions
                m = jnp.maximum(m, pltpu.roll(pos, shift=width - q * 2 * cout, axis=1))
            mks.append(m[:, 0:2 * cout])                                     # [T*Bp, 2*cout]
        if n_tdnn == 1:
            char2 = mks[0]
        else:
            char2 = jnp.concatenate([mk[:, 0:mk.shape[1] // 2] for mk in mks]
                                    + [mk[:, mk.shape[1] // 2:] for mk in mks], axis=1)

        # ---------------- BiLSTM encoder: both directions fused, loop unrolled --------------
        # Backward gate columns already receive time-reversed inputs via the packed W_ih, so
        # at step t the single row-slice xg[t*Bp:(t+1)*Bp] feeds both directions.
        xg = (jnp.dot(word2_ref[...], W("wih_word"), preferred_element_type=f32)
              + jnp.dot(char2, W("wih_char"), preferred_element_type=f32))   # [T*Bp, 8H]
        whh = W("whh")                                                       # [2H, 8H] block-diag
        bias = W("b_lstm")                                                   # [1, 8H]
        # TODO(synk): whh could stay staged in MXU weight registers across the unrolled
        # recurrence (pltpu.matmul_push_rhs / matmul_acc_lhs); kept as jnp.dot for robustness.
        h = jnp.zeros((Bp, 2 * H), f32)    # [h_fwd || h_bwd]
        c = jnp.zeros((Bp, 2 * H), f32)    # [c_fwd || c_bwd]
        for t in range(T_enc):             # static unroll (T_enc compile-time constant)
            g = jnp.dot(h, whh, preferred_element_type=f32) + xg[t * Bp:(t + 1) * Bp, :] + bias
            sg = jax.nn.sigmoid(g)         # whole packed-gate EUP pushes
            th = jnp.tanh(g)
            c = sg[:, 2 * H:4 * H] * c + sg[:, 0:2 * H] * th[:, 4 * H:6 * H]
            h = sg[:, 6 * H:8 * H] * jnp.tanh(c)
        context = c                                                          # c_n, [Bp, 2H]

        # ---------------- mu / logvar (stacked), reparameterise, masked KLD -----------------
        ml = jnp.dot(context, W("w_ml"), preferred_element_type=f32) + W("b_ml")   # [Bp, 2*Lat]
        mu = ml[:, 0:Lat]
        logvar = ml[:, Lat:2 * Lat]
        z = eps_ref[...] * jnp.exp(0.5 * logvar) + mu                        # [Bp, Lat]
        rid = lax.broadcasted_iota(jnp.int32, (Bp, Lat), 0)
        kld_terms = jnp.where(rid < B, logvar - mu * mu - jnp.exp(logvar) + 1.0, 0.0)
        kld_val = -0.5 * jnp.sum(kld_terms) * (1.0 / B)

        # ---------------- Decoder: dilated causal CNN stack + FC ----------------------------
        # dec_ref already has cin0 columns with the z-part zeroed; z is placed via a matmul
        # (z @ [0 | I]) and broadcast over time -> no odd-width lane concat, no [z]*Td concat.
        zfull = jnp.dot(z, W("z_place"), preferred_element_type=f32)         # [Bp, cin0]
        x = dec_ref[...] + jnp.broadcast_to(zfull[None], (Td, Bp, cin0)).reshape(Td * Bp, cin0)
        for li, ((cout, cin, kw), dil) in enumerate(zip(p.decoder_kernels, p.decoder_dilations)):
            pad = dil * (kw - 1)
            xp = jnp.concatenate([jnp.zeros((pad * Bp, cin), f32), x], axis=0)   # 8-row aligned
            acc = jnp.broadcast_to(W(f"dec{li}_b"), (Td * Bp, cout))             # bias as init
            for j in range(kw):            # static taps; 8-sublane-aligned contiguous slices
                r0 = j * dil * Bp
                acc = acc + jnp.dot(xp[r0:r0 + Td * Bp, :], W(f"dec{li}_w{j}"),
                                    preferred_element_type=f32)
            x = jnp.maximum(acc, 0.0)
        logits = jnp.dot(x, W("w_fc"), preferred_element_type=f32) + W("b_fc")   # [Td*Bp, v_pad]

        # Stash KLD in a padded lane (row 0, last col): single lane-dense output, no extra DMA.
        rr = lax.broadcasted_iota(jnp.int32, (Td * Bp, v_pad), 0)
        cc = lax.broadcasted_iota(jnp.int32, (Td * Bp, v_pad), 1)
        logits = jnp.where((rr == 0) & (cc == v_pad - 1), kld_val, logits)
        logits_ref[...] = logits.astype(logits_ref.dtype)

    return kernel


# ----------------------------------------------------------------------------- weight init
def init_weights(p, key):
    """Torch-layout parameters (same as nn.Module would hold)."""
    ks = iter(jax.random.split(key, 32))
    H = p.encoder_rnn_size
    D = p.word_embed_size + p.sum_depth
    ub_lstm = 1.0 / jnp.sqrt(float(H))

    def uni(k, shape, bound):
        return jax.random.uniform(k, shape, jnp.float32, -bound, bound)

    w = {}
    w["word_embed"] = 0.1 * jax.random.normal(next(ks), (p.word_vocab_size, p.word_embed_size), jnp.float32)
    w["char_embed"] = 0.1 * jax.random.normal(next(ks), (p.char_vocab_size, p.char_embed_size), jnp.float32)
    w["tdnn"] = [
        0.05 * jax.random.normal(next(ks), (cout, p.char_embed_size, kw), jnp.float32)
        for (cout, kw) in p.tdnn_kernels
    ]
    for direction in ("lstm_fwd", "lstm_bwd"):
        w[direction] = (
            uni(next(ks), (4 * H, D), ub_lstm),   # W_ih (gate order i,f,g,o)
            uni(next(ks), (4 * H, H), ub_lstm),   # W_hh
            uni(next(ks), (4 * H,), ub_lstm),     # b_ih
            uni(next(ks), (4 * H,), ub_lstm),     # b_hh
        )
    ctx = 2 * H
    ub_ctx = 1.0 / jnp.sqrt(float(ctx))
    w["ctx_mu"] = (uni(next(ks), (p.latent_variable_size, ctx), ub_ctx),
                   uni(next(ks), (p.latent_variable_size,), ub_ctx))
    w["ctx_logvar"] = (uni(next(ks), (p.latent_variable_size, ctx), ub_ctx),
                       uni(next(ks), (p.latent_variable_size,), ub_ctx))
    w["dec_conv"] = [
        (0.05 * jax.random.normal(next(ks), (cout, cin, kw), jnp.float32),
         0.05 * jax.random.normal(next(ks), (cout,), jnp.float32))
        for (cout, cin, kw) in p.decoder_kernels
    ]
    out_size = p.decoder_kernels[-1][0]
    ub_fc = 1.0 / jnp.sqrt(float(out_size))
    w["dec_fc"] = (uni(next(ks), (p.word_vocab_size, out_size), ub_fc),
                   uni(next(ks), (p.word_vocab_size,), ub_fc))
    return w


# ----------------------------------------------------------------------------- weight prep
def prepare_weights(p, w):
    """One-time repacking of torch-layout weights into a single lane-padded VMEM blob."""
    H = p.encoder_rnn_size
    Ew = p.word_embed_size
    Ec = p.char_embed_size
    L = p.max_word_len
    Lat = p.latent_variable_size
    V = p.word_vocab_size
    cin0 = p.decoder_kernels[0][1]

    entries = []

    def add(name, arr):
        entries.append((name, jnp.asarray(arr, jnp.float32)))

    # --- TDNN block weights, doubled so one matmul yields fwd & reversed-time char features --
    for idx, ((cout, kw), wt) in enumerate(zip(p.tdnn_kernels, w["tdnn"])):
        l_out = L - kw + 1
        wt_t = jnp.transpose(wt, (2, 1, 0))                                  # [kw, Ec, cout]
        blk = jnp.zeros((2 * L * Ec, l_out * 2 * cout), jnp.float32)
        for pos in range(l_out):
            for j in range(kw):
                blk = blk.at[(pos + j) * Ec:(pos + j + 1) * Ec,
                             pos * 2 * cout:pos * 2 * cout + cout].set(wt_t[j])
                blk = blk.at[L * Ec + (pos + j) * Ec:L * Ec + (pos + j + 1) * Ec,
                             pos * 2 * cout + cout:(pos + 1) * 2 * cout].set(wt_t[j])
        add(f"tdnn{idx}", blk)

    # --- BiLSTM: fused directions, gate-interleaved cols [i_f,i_b,f_f,f_b,g_f,g_b,o_f,o_b] ---
    wih_f = jnp.transpose(w["lstm_fwd"][0])    # [D, 4H]
    whh_f = jnp.transpose(w["lstm_fwd"][1])    # [H, 4H]
    b_f = w["lstm_fwd"][2] + w["lstm_fwd"][3]
    wih_b = jnp.transpose(w["lstm_bwd"][0])
    whh_b = jnp.transpose(w["lstm_bwd"][1])
    b_b = w["lstm_bwd"][2] + w["lstm_bwd"][3]

    def fuse_dirs(wf, wb):
        # Input rows doubled: rows 0:R drive fwd gate cols, rows R:2R drive bwd gate cols.
        rows = wf.shape[0]
        out = jnp.zeros((2 * rows, 8 * H), jnp.float32)
        for k in range(4):
            out = out.at[0:rows, k * 2 * H:k * 2 * H + H].set(wf[:, k * H:(k + 1) * H])
            out = out.at[rows:2 * rows, k * 2 * H + H:(k + 1) * 2 * H].set(wb[:, k * H:(k + 1) * H])
        return out

    add("wih_word", fuse_dirs(wih_f[:Ew], wih_b[:Ew]))        # [2*Ew, 8H]
    add("wih_char", fuse_dirs(wih_f[Ew:], wih_b[Ew:]))        # [2*sum_depth, 8H]

    zH = jnp.zeros((H, H), jnp.float32)
    cols = []
    for k in range(4):
        cf = jnp.concatenate([whh_f[:, k * H:(k + 1) * H], zH], axis=0)
        cb = jnp.concatenate([zH, whh_b[:, k * H:(k + 1) * H]], axis=0)
        cols.append(jnp.concatenate([cf, cb], axis=1))
    add("whh", jnp.concatenate(cols, axis=1))                 # [2H, 8H]
    add("b_lstm", jnp.concatenate(
        [jnp.concatenate([b_f[k * H:(k + 1) * H], b_b[k * H:(k + 1) * H]]) for k in range(4)]
    ).reshape(1, 8 * H))

    # --- stacked mu/logvar projection ---------------------------------------------------------
    w_mu, b_mu = w["ctx_mu"]
    w_lv, b_lv = w["ctx_logvar"]
    add("w_ml", jnp.concatenate([jnp.transpose(w_mu), jnp.transpose(w_lv)], axis=1))   # [2H, 2*Lat]
    add("b_ml", jnp.concatenate([b_mu, b_lv]).reshape(1, 2 * Lat))

    # --- z placement matrix (zero-pads z into decoder layer-0 input columns via a matmul) -----
    add("z_place", jnp.concatenate([jnp.zeros((Lat, Ew), jnp.float32),
                                    jnp.eye(Lat, dtype=jnp.float32)], axis=1))          # [Lat, cin0]

    # --- decoder convs (per-tap) + bias --------------------------------------------------------
    for li, (cw, cb) in enumerate(w["dec_conv"]):
        cw_t = jnp.transpose(cw, (2, 1, 0))                                  # [kw, cin, cout]
        for j in range(cw_t.shape[0]):
            add(f"dec{li}_w{j}", cw_t[j])
        add(f"dec{li}_b", cb.reshape(1, -1))

    # --- output FC, padded to a lane-dense 128-multiple with >=1 spare column for the KLD -----
    wfc, bfc = w["dec_fc"]
    out_size = wfc.shape[1]
    v_pad = ((V + 128) // 128) * 128
    add("w_fc", jnp.zeros((out_size, v_pad), jnp.float32).at[:, :V].set(jnp.transpose(wfc)))
    add("b_fc", jnp.zeros((1, v_pad), jnp.float32).at[:, :V].set(bfc))

    # --- pack everything into one lane-padded blob (8-row-aligned static offsets) --------------
    lane = ((max(arr.shape[1] for _, arr in entries) + 127) // 128) * 128
    offs = {}
    r = 0
    for name, arr in entries:
        nr, nc = int(arr.shape[0]), int(arr.shape[1])
        offs[name] = (r, nr, nc)
        r += ((nr + 7) // 8) * 8
    total_rows = ((r + 7) // 8) * 8
    blob = jnp.zeros((total_rows, lane), jnp.float32)
    for name, arr in entries:
        r0, nr, nc = offs[name]
        blob = blob.at[r0:r0 + nr, 0:nc].set(arr)

    prep = {"word_embed": w["word_embed"], "char_embed": w["char_embed"], "wblob": blob}
    layout = {"offs": offs, "lane": lane, "v_pad": v_pad, "cin0": cin0}
    return prep, layout


# ----------------------------------------------------------------------------- forward
def rvae_forward(p, layout, prep, drop_prob, enc_word, enc_char, dec_word, eps_z, drop_key):
    """Mirror of RVAE_dilated.forward (classic, non-regularised encoder), z=None path."""
    B, T_enc = enc_word.shape
    Td = dec_word.shape[1]
    Ew = p.word_embed_size
    Ec = p.char_embed_size
    L = p.max_word_len
    Lat = p.latent_variable_size
    V = p.word_vocab_size
    cin0 = layout["cin0"]
    v_pad = layout["v_pad"]
    Bp = max(8, ((B + 7) // 8) * 8)            # pad batch rows to 8 sublanes for aligned views

    # ---- Embedding gathers stay in plain JAX (tiny vocabs), laid out T-major, batch-padded ---
    # TODO(synk): embedding gather stays in plain JAX (no clean Pallas gather for tiny vocabs).
    enc_word_p = jnp.pad(enc_word, ((0, Bp - B), (0, 0)))
    enc_char_p = jnp.pad(enc_char, ((0, Bp - B), (0, 0), (0, 0)))
    dec_word_p = jnp.pad(dec_word, ((0, Bp - B), (0, 0)))
    eps_p = jnp.pad(eps_z, ((0, Bp - B), (0, 0)))

    word_e = jnp.take(prep["word_embed"], jnp.transpose(enc_word_p), axis=0)          # [T, Bp, Ew]
    word2 = jnp.concatenate([word_e, word_e[::-1]], axis=-1).reshape(T_enc * Bp, 2 * Ew)
    xc_e = jnp.take(prep["char_embed"], jnp.transpose(enc_char_p, (1, 0, 2)),
                    axis=0).reshape(T_enc, Bp, L * Ec)                                # [T, Bp, L*Ec]
    xc2 = jnp.concatenate([xc_e, xc_e[::-1]], axis=-1).reshape(T_enc * Bp, 2 * L * Ec)

    dec_e = jnp.take(prep["word_embed"], jnp.transpose(dec_word_p), axis=0)           # [Td, Bp, Ew]
    if drop_prob > 0.0:
        keep = jax.random.bernoulli(drop_key, 1.0 - drop_prob, dec_e.shape)
        dec_e = dec_e * keep / (1.0 - drop_prob)
        # TODO(synk): dropout mask uses JAX RNG; exact torch RNG stream is not reproducible.
    dec_in = jnp.pad(dec_e, ((0, 0), (0, 0), (0, cin0 - Ew))).reshape(Td * Bp, cin0)  # z cols zero

    kernel = _make_rvae_kernel(p, layout, Bp, B, T_enc, Td)
    logits2d = pl.pallas_call(
        kernel,
        out_shape=jax.ShapeDtypeStruct((Td * Bp, v_pad), jnp.float32),
        in_specs=[VMEM] * 5,
        out_specs=VMEM,
    )(word2, xc2, dec_in, eps_p, prep["wblob"])

    kld = logits2d[0, v_pad - 1]                                                      # stashed KLD
    logits = jnp.transpose(logits2d.reshape(Td, Bp, v_pad)[:, :B, :V], (1, 0, 2))     # [B, Td, V]
    return logits, kld


# ----------------------------------------------------------------------------- main
if __name__ == "__main__":
    p = Params()
    key = jax.random.PRNGKey(0)
    k_w, k_ew, k_ec, k_dw, k_eps, k_drop = jax.random.split(key, 6)

    torch_weights = init_weights(p, k_w)
    prep, layout = prepare_weights(p, torch_weights)       # one-time repacking, off the hot path

    B, T_enc, T_dec = 2, 8, 9                               # decoder input is [batch, max_seq_len + 1]
    enc_word = jax.random.randint(k_ew, (B, T_enc), 1, p.word_vocab_size, jnp.int32)
    enc_char = jax.random.randint(k_ec, (B, T_enc, p.max_word_len), 1, p.char_vocab_size, jnp.int32)
    dec_word = jax.random.randint(k_dw, (B, T_dec), 1, p.word_vocab_size, jnp.int32)
    eps_z = jax.random.normal(k_eps, (B, p.latent_variable_size), jnp.float32)

    fwd = jax.jit(functools.partial(rvae_forward, p, layout), static_argnums=(1,))
    logits, kld = fwd(prep, 0.0, enc_word, enc_char, dec_word, eps_z, k_drop)
    logits = jax.block_until_ready(logits)
    kld = jax.block_until_ready(kld)

    assert logits.shape == (B, T_dec, p.word_vocab_size)
    assert kld.shape == ()
    assert bool(jnp.all(jnp.isfinite(logits))) and bool(jnp.isfinite(kld))
    print("KERNEL_OK")
</pallas_src>

<mosaic_0001>
module attributes {stable_mosaic.version = 11 : i64} {
  func.func @kernel(%arg0: memref<64x64xf32, #tpu.memory_space<vmem>>, %arg1: memref<64x96xf32, #tpu.memory_space<vmem>>, %arg2: memref<72x48xf32, #tpu.memory_space<vmem>>, %arg3: memref<8x16xf32, #tpu.memory_space<vmem>>, %arg4: memref<792x256xf32, #tpu.memory_space<vmem>>, %arg5: memref<72x128xf32, #tpu.memory_space<vmem>>) attributes {dimension_semantics = [], scalar_prefetch = 0 : i64, scratch_operands = 0 : i64, tpu.core_type = #tpu.core_type<tc>} {
    %c0 = arith.constant 0 : index
    %c0_0 = arith.constant 0 : index
    %0 = vector.load %arg1[%c0, %c0_0] : memref<64x96xf32, #tpu.memory_space<vmem>>, vector<64x96xf32>
    %c0_1 = arith.constant 0 : index
    %c0_2 = arith.constant 0 : index
    %1 = vector.load %arg4[%c0_1, %c0_2] : memref<792x256xf32, #tpu.memory_space<vmem>>, vector<96x128xf32>
    %cst = arith.constant dense<0.000000e+00> : vector<64x128xf32>
    %2 = tpu.matmul %0, %1, %cst {dimension_numbers = #tpu.dot_dimension_numbers<[1], [0], [0], [1], [0, 0, 1, 1], [], []>} : vector<64x96xf32>, vector<96x128xf32>, vector<64x128xf32> -> vector<64x128xf32>
    %cst_3 = arith.constant 0.000000e+00 : f32
    %3 = vector.broadcast %cst_3 : f32 to vector<64x128xf32>
    %4 = arith.maximumf %2, %3 : vector<64x128xf32>
    %c96_i32 = arith.constant 96 : i32
    %5 = tpu.dynamic_rotate %4 by %c96_i32 dim 1 : vector<64x128xf32>, i32 -> vector<64x128xf32>
    %6 = arith.maximumf %4, %5 : vector<64x128xf32>
    %c64_i32 = arith.constant 64 : i32
    %7 = tpu.dynamic_rotate %4 by %c64_i32 dim 1 : vector<64x128xf32>, i32 -> vector<64x128xf32>
    %8 = arith.maximumf %6, %7 : vector<64x128xf32>
    %c32_i32 = arith.constant 32 : i32
    %9 = tpu.dynamic_rotate %4 by %c32_i32 dim 1 : vector<64x128xf32>, i32 -> vector<64x128xf32>
    %10 = arith.maximumf %8, %9 : vector<64x128xf32>
    %11 = vector.extract_strided_slice %10 {offsets = [0, 0], sizes = [64, 32], strides = [1, 1]} : vector<64x128xf32> to vector<64x32xf32>
    %c0_4 = arith.constant 0 : index
    %c0_5 = arith.constant 0 : index
    %12 = vector.load %arg0[%c0_4, %c0_5] : memref<64x64xf32, #tpu.memory_space<vmem>>, vector<64x64xf32>
    %c96 = arith.constant 96 : index
    %c0_6 = arith.constant 0 : index
    %13 = vector.load %arg4[%c96, %c0_6] : memref<792x256xf32, #tpu.memory_space<vmem>>, vector<64x256xf32>
    %cst_7 = arith.constant dense<0.000000e+00> : vector<64x256xf32>
    %14 = tpu.matmul %12, %13, %cst_7 {dimension_numbers = #tpu.dot_dimension_numbers<[1], [0], [0], [1], [0, 0, 1, 1], [], []>} : vector<64x64xf32>, vector<64x256xf32>, vector<64x256xf32> -> vector<64x256xf32>
    %c160 = arith.constant 160 : index
    %c0_8 = arith.constant 0 : index
    %15 = vector.load %arg4[%c160, %c0_8] : memref<792x256xf32, #tpu.memory_space<vmem>>, vector<32x256xf32>
    %cst_9 = arith.constant dense<0.000000e+00> : vector<64x256xf32>
    %16 = tpu.matmul %11, %15, %cst_9 {dimension_numbers = #tpu.dot_dimension_numbers<[1], [0], [0], [1], [0, 0, 1, 1], [], []>} : vector<64x32xf32>, vector<32x256xf32>, vector<64x256xf32> -> vector<64x256xf32>
    %17 = arith.addf %14, %16 : vector<64x256xf32>
    %c192 = arith.constant 192 : index
    %c0_10 = arith.constant 0 : index
    %18 = vector.load %arg4[%c192, %c0_10] : memref<792x256xf32, #tpu.memory_space<vmem>>, vector<64x256xf32>
    %c256 = arith.constant 256 : index
    %c0_11 = arith.constant 0 : index
    %19 = vector.load %arg4[%c256, %c0_11] : memref<792x256xf32, #tpu.memory_space<vmem>>, vector<1x256xf32>
    %cst_12 = arith.constant 0.000000e+00 : f32
    %20 = vector.broadcast %cst_12 : f32 to vector<8x64xf32>
    %cst_13 = arith.constant 0.000000e+00 : f32
    %21 = vector.broadcast %cst_13 : f32 to vector<8x64xf32>
    %cst_14 = arith.constant dense<0.000000e+00> : vector<8x256xf32>
    %22 = tpu.matmul %20, %18, %cst_14 {dimension_numbers = #tpu.dot_dimension_numbers<[1], [0], [0], [1], [0, 0, 1, 1], [], []>} : vector<8x64xf32>, vector<64x256xf32>, vector<8x256xf32> -> vector<8x256xf32>
    %23 = vector.extract_strided_slice %17 {offsets = [0, 0], sizes = [8, 256], strides = [1, 1]} : vector<64x256xf32> to vector<8x256xf32>
    %24 = arith.addf %22, %23 : vector<8x256xf32>
    %25 = vector.broadcast %19 : vector<1x256xf32> to vector<8x256xf32>
    %26 = arith.addf %24, %25 : vector<8x256xf32>
    %27 = arith.negf %26 : vector<8x256xf32>
    %28 = math.exp %27 : vector<8x256xf32>
    %cst_15 = arith.constant 1.000000e+00 : f32
    %29 = vector.broadcast %cst_15 : f32 to vector<8x256xf32>
    %30 = arith.addf %29, %28 : vector<8x256xf32>
    %31 = arith.divf %29, %30 : vector<8x256xf32>
    %32 = math.tanh %26 : vector<8x256xf32>
    %33 = vector.extract_strided_slice %31 {offsets = [0, 64], sizes = [8, 64], strides = [1, 1]} : vector<8x256xf32> to vector<8x64xf32>
    %34 = arith.mulf %33, %21 : vector<8x64xf32>
    %35 = vector.extract_strided_slice %31 {offsets = [0, 0], sizes = [8, 64], strides = [1, 1]} : vector<8x256xf32> to vector<8x64xf32>
    %36 = vector.extract_strided_slice %32 {offsets = [0, 128], sizes = [8, 64], strides = [1, 1]} : vector<8x256xf32> to vector<8x64xf32>
    %37 = arith.mulf %35, %36 : vector<8x64xf32>
    %38 = arith.addf %34, %37 : vector<8x64xf32>
    %39 = vector.extract_strided_slice %31 {offsets = [0, 192], sizes = [8, 64], strides = [1, 1]} : vector<8x256xf32> to vector<8x64xf32>
    %40 = math.tanh %38 : vector<8x64xf32>
    %41 = arith.mulf %39, %40 : vector<8x64xf32>
    %cst_16 = arith.constant dense<0.000000e+00> : vector<8x256xf32>
    %42 = tpu.matmul %41, %18, %cst_16 {dimension_numbers = #tpu.dot_dimension_numbers<[1], [0], [0], [1], [0, 0, 1, 1], [], []>} : vector<8x64xf32>, vector<64x256xf32>, vector<8x256xf32> -> vector<8x256xf32>
    %43 = vector.extract_strided_slice %17 {offsets = [8, 0], sizes = [8, 256], strides = [1, 1]} : vector<64x256xf32> to vector<8x256xf32>
    %44 = arith.addf %42, %43 : vector<8x256xf32>
    %45 = vector.broadcast %19 : vector<1x256xf32> to vector<8x256xf32>
    %46 = arith.addf %44, %45 : vector<8x256xf32>
    %47 = arith.negf %46 : vector<8x256xf32>
    %48 = math.exp %47 : vector<8x256xf32>
    %cst_17 = arith.constant 1.000000e+00 : f32
    %49 = vector.broadcast %cst_17 : f32 to vector<8x256xf32>
    %50 = arith.addf %49, %48 : vector<8x256xf32>
    %51 = arith.divf %49, %50 : vector<8x256xf32>
    %52 = math.tanh %46 : vector<8x256xf32>
    %53 = vector.extract_strided_slice %51 {offsets = [0, 64], sizes = [8, 64], strides = [1, 1]} : vector<8x256xf32> to vector<8x64xf32>
    %54 = arith.mulf %53, %38 : vector<8x64xf32>
    %55 = vector.extract_strided_slice %51 {offsets = [0, 0], sizes = [8, 64], strides = [1, 1]} : vector<8x256xf32> to vector<8x64xf32>
    %56 = vector.extract_strided_slice %52 {offsets = [0, 128], sizes = [8, 64], strides = [1, 1]} : vector<8x256xf32> to vector<8x64xf32>
    %57 = arith.mulf %55, %56 : vector<8x64xf32>
    %58 = arith.addf %54, %57 : vector<8x64xf32>
    %59 = vector.extract_strided_slice %51 {offsets = [0, 192], sizes = [8, 64], strides = [1, 1]} : vector<8x256xf32> to vector<8x64xf32>
    %60 = math.tanh %58 : vector<8x64xf32>
    %61 = arith.mulf %59, %60 : vector<8x64xf32>
    %cst_18 = arith.constant dense<0.000000e+00> : vector<8x256xf32>
    %62 = tpu.matmul %61, %18, %cst_18 {dimension_numbers = #tpu.dot_dimension_numbers<[1], [0], [0], [1], [0, 0, 1, 1], [], []>} : vector<8x64xf32>, vector<64x256xf32>, vector<8x256xf32> -> vector<8x256xf32>
    %63 = vector.extract_strided_slice %17 {offsets = [16, 0], sizes = [8, 256], strides = [1, 1]} : vector<64x256xf32> to vector<8x256xf32>
    %64 = arith.addf %62, %63 : vector<8x256xf32>
    %65 = vector.broadcast %19 : vector<1x256xf32> to vector<8x256xf32>
    %66 = arith.addf %64, %65 : vector<8x256xf32>
    %67 = arith.negf %66 : vector<8x256xf32>
    %68 = math.exp %67 : vector<8x256xf32>
    %cst_19 = arith.constant 1.000000e+00 : f32
    %69 = vector.broadcast %cst_19 : f32 to vector<8x256xf32>
    %70 = arith.addf %69, %68 : vector<8x256xf32>
    %71 = arith.divf %69, %70 : vector<8x256xf32>
    %72 = math.tanh %66 : vector<8x256xf32>
    %73 = vector.extract_strided_slice %71 {offsets = [0, 64], sizes = [8, 64], strides = [1, 1]} : vector<8x256xf32> to vector<8x64xf32>
    %74 = arith.mulf %73, %58 : vector<8x64xf32>
    %75 = vector.extract_strided_slice %71 {offsets = [0, 0], sizes = [8, 64], strides = [1, 1]} : vector<8x256xf32> to vector<8x64xf32>
    %76 = vector.extract_strided_slice %72 {offsets = [0, 128], sizes = [8, 64], strides = [1, 1]} : vector<8x256xf32> to vector<8x64xf32>
    %77 = arith.mulf %75, %76 : vector<8x64xf32>
    %78 = arith.addf %74, %77 : vector<8x64xf32>
    %79 = vector.extract_strided_slice %71 {offsets = [0, 192], sizes = [8, 64], strides = [1, 1]} : vector<8x256xf32> to vector<8x64xf32>
    %80 = math.tanh %78 : vector<8x64xf32>
    %81 = arith.mulf %79, %80 : vector<8x64xf32>
    %cst_20 = arith.constant dense<0.000000e+00> : vector<8x256xf32>
    %82 = tpu.matmul %81, %18, %cst_20 {dimension_numbers = #tpu.dot_dimension_numbers<[1], [0], [0], [1], [0, 0, 1, 1], [], []>} : vector<8x64xf32>, vector<64x256xf32>, vector<8x256xf32> -> vector<8x256xf32>
    %83 = vector.extract_strided_slice %17 {offsets = [24, 0], sizes = [8, 256], strides = [1, 1]} : vector<64x256xf32> to vector<8x256xf32>
    %84 = arith.addf %82, %83 : vector<8x256xf32>
    %85 = vector.broadcast %19 : vector<1x256xf32> to vector<8x256xf32>
    %86 = arith.addf %84, %85 : vector<8x256xf32>
    %87 = arith.negf %86 : vector<8x256xf32>
    %88 = math.exp %87 : vector<8x256xf32>
    %cst_21 = arith.constant 1.000000e+00 : f32
    %89 = vector.broadcast %cst_21 : f32 to vector<8x256xf32>
    %90 = arith.addf %89, %88 : vector<8x256xf32>
    %91 = arith.divf %89, %90 : vector<8x256xf32>
    %92 = math.tanh %86 : vector<8x256xf32>
    %93 = vector.extract_strided_slice %91 {offsets = [0, 64], sizes = [8, 64], strides = [1, 1]} : vector<8x256xf32> to vector<8x64xf32>
    %94 = arith.mulf %93, %78 : vector<8x64xf32>
    %95 = vector.extract_strided_slice %91 {offsets = [0, 0], sizes = [8, 64], strides = [1, 1]} : vector<8x256xf32> to vector<8x64xf32>
    %96 = vector.extract_strided_slice %92 {offsets = [0, 128], sizes = [8, 64], strides = [1, 1]} : vector<8x256xf32> to vector<8x64xf32>
    %97 = arith.mulf %95, %96 : vector<8x64xf32>
    %98 = arith.addf %94, %97 : vector<8x64xf32>
    %99 = vector.extract_strided_slice %91 {offsets = [0, 192], sizes = [8, 64], strides = [1, 1]} : vector<8x256xf32> to vector<8x64xf32>
    %100 = math.tanh %98 : vector<8x64xf32>
    %101 = arith.mulf %99, %100 : vector<8x64xf32>
    %cst_22 = arith.constant dense<0.000000e+00> : vector<8x256xf32>
    %102 = tpu.matmul %101, %18, %cst_22 {dimension_numbers = #tpu.dot_dimension_numbers<[1], [0], [0], [1], [0, 0, 1, 1], [], []>} : vector<8x64xf32>, vector<64x256xf32>, vector<8x256xf32> -> vector<8x256xf32>
    %103 = vector.extract_strided_slice %17 {offsets = [32, 0], sizes = [8, 256], strides = [1, 1]} : vector<64x256xf32> to vector<8x256xf32>
    %104 = arith.addf %102, %103 : vector<8x256xf32>
    %105 = vector.broadcast %19 : vector<1x256xf32> to vector<8x256xf32>
    %106 = arith.addf %104, %105 : vector<8x256xf32>
    %107 = arith.negf %106 : vector<8x256xf32>
    %108 = math.exp %107 : vector<8x256xf32>
    %cst_23 = arith.constant 1.000000e+00 : f32
    %109 = vector.broadcast %cst_23 : f32 to vector<8x256xf32>
    %110 = arith.addf %109, %108 : vector<8x256xf32>
    %111 = arith.divf %109, %110 : vector<8x256xf32>
    %112 = math.tanh %106 : vector<8x256xf32>
    %113 = vector.extract_strided_slice %111 {offsets = [0, 64], sizes = [8, 64], strides = [1, 1]} : vector<8x256xf32> to vector<8x64xf32>
    %114 = arith.mulf %113, %98 : vector<8x64xf32>
    %115 = vector.extract_strided_slice %111 {offsets = [0, 0], sizes = [8, 64], strides = [1, 1]} : vector<8x256xf32> to vector<8x64xf32>
    %116 = vector.extract_strided_slice %112 {offsets = [0, 128], sizes = [8, 64], strides = [1, 1]} : vector<8x256xf32> to vector<8x64xf32>
    %117 = arith.mulf %115, %116 : vector<8x64xf32>
    %118 = arith.addf %114, %117 : vector<8x64xf32>
    %119 = vector.extract_strided_slice %111 {offsets = [0, 192], sizes = [8, 64], strides = [1, 1]} : vector<8x256xf32> to vector<8x64xf32>
    %120 = math.tanh %118 : vector<8x64xf32>
    %121 = arith.mulf %119, %120 : vector<8x64xf32>
    %cst_24 = arith.constant dense<0.000000e+00> : vector<8x256xf32>
    %122 = tpu.matmul %121, %18, %cst_24 {dimension_numbers = #tpu.dot_dimension_numbers<[1], [0], [0], [1], [0, 0, 1, 1], [], []>} : vector<8x64xf32>, vector<64x256xf32>, vector<8x256xf32> -> vector<8x256xf32>
    %123 = vector.extract_strided_slice %17 {offsets = [40, 0], sizes = [8, 256], strides = [1, 1]} : vector<64x256xf32> to vector<8x256xf32>
    %124 = arith.addf %122, %123 : vector<8x256xf32>
    %125 = vector.broadcast %19 : vector<1x256xf32> to vector<8x256xf32>
    %126 = arith.addf %124, %125 : vector<8x256xf32>
    %127 = arith.negf %126 : vector<8x256xf32>
    %128 = math.exp %127 : vector<8x256xf32>
    %cst_25 = arith.constant 1.000000e+00 : f32
    %129 = vector.broadcast %cst_25 : f32 to vector<8x256xf32>
    %130 = arith.addf %129, %128 : vector<8x256xf32>
    %131 = arith.divf %129, %130 : vector<8x256xf32>
    %132 = math.tanh %126 : vector<8x256xf32>
    %133 = vector.extract_strided_slice %131 {offsets = [0, 64], sizes = [8, 64], strides = [1, 1]} : vector<8x256xf32> to vector<8x64xf32>
    %134 = arith.mulf %133, %118 : vector<8x64xf32>
    %135 = vector.extract_strided_slice %131 {offsets = [0, 0], sizes = [8, 64], strides = [1, 1]} : vector<8x256xf32> to vector<8x64xf32>
    %136 = vector.extract_strided_slice %132 {offsets = [0, 128], sizes = [8, 64], strides = [1, 1]} : vector<8x256xf32> to vector<8x64xf32>
    %137 = arith.mulf %135, %136 : vector<8x64xf32>
    %138 = arith.addf %134, %137 : vector<8x64xf32>
    %139 = vector.extract_strided_slice %131 {offsets = [0, 192], sizes = [8, 64], strides = [1, 1]} : vector<8x256xf32> to vector<8x64xf32>
    %140 = math.tanh %138 : vector<8x64xf32>
    %141 = arith.mulf %139, %140 : vector<8x64xf32>
    %cst_26 = arith.constant dense<0.000000e+00> : vector<8x256xf32>
    %142 = tpu.matmul %141, %18, %cst_26 {dimension_numbers = #tpu.dot_dimension_numbers<[1], [0], [0], [1], [0, 0, 1, 1], [], []>} : vector<8x64xf32>, vector<64x256xf32>, vector<8x256xf32> -> vector<8x256xf32>
    %143 = vector.extract_strided_slice %17 {offsets = [48, 0], sizes = [8, 256], strides = [1, 1]} : vector<64x256xf32> to vector<8x256xf32>
    %144 = arith.addf %142, %143 : vector<8x256xf32>
    %145 = vector.broadcast %19 : vector<1x256xf32> to vector<8x256xf32>
    %146 = arith.addf %144, %145 : vector<8x256xf32>
    %147 = arith.negf %146 : vector<8x256xf32>
    %148 = math.exp %147 : vector<8x256xf32>
    %cst_27 = arith.constant 1.000000e+00 : f32
    %149 = vector.broadcast %cst_27 : f32 to vector<8x256xf32>
    %150 = arith.addf %149, %148 : vector<8x256xf32>
    %151 = arith.divf %149, %150 : vector<8x256xf32>
    %152 = math.tanh %146 : vector<8x256xf32>
    %153 = vector.extract_strided_slice %151 {offsets = [0, 64], sizes = [8, 64], strides = [1, 1]} : vector<8x256xf32> to vector<8x64xf32>
    %154 = arith.mulf %153, %138 : vector<8x64xf32>
    %155 = vector.extract_strided_slice %151 {offsets = [0, 0], sizes = [8, 64], strides = [1, 1]} : vector<8x256xf32> to vector<8x64xf32>
    %156 = vector.extract_strided_slice %152 {offsets = [0, 128], sizes = [8, 64], strides = [1, 1]} : vector<8x256xf32> to vector<8x64xf32>
    %157 = arith.mulf %155, %156 : vector<8x64xf32>
    %158 = arith.addf %154, %157 : vector<8x64xf32>
    %159 = vector.extract_strided_slice %151 {offsets = [0, 192], sizes = [8, 64], strides = [1, 1]} : vector<8x256xf32> to vector<8x64xf32>
    %160 = math.tanh %158 : vector<8x64xf32>
    %161 = arith.mulf %159, %160 : vector<8x64xf32>
    %cst_28 = arith.constant dense<0.000000e+00> : vector<8x256xf32>
    %162 = tpu.matmul %161, %18, %cst_28 {dimension_numbers = #tpu.dot_dimension_numbers<[1], [0], [0], [1], [0, 0, 1, 1], [], []>} : vector<8x64xf32>, vector<64x256xf32>, vector<8x256xf32> -> vector<8x256xf32>
    %163 = vector.extract_strided_slice %17 {offsets = [56, 0], sizes = [8, 256], strides = [1, 1]} : vector<64x256xf32> to vector<8x256xf32>
    %164 = arith.addf %162, %163 : vector<8x256xf32>
    %165 = vector.broadcast %19 : vector<1x256xf32> to vector<8x256xf32>
    %166 = arith.addf %164, %165 : vector<8x256xf32>
    %167 = arith.negf %166 : vector<8x256xf32>
    %168 = math.exp %167 : vector<8x256xf32>
    %cst_29 = arith.constant 1.000000e+00 : f32
    %169 = vector.broadcast %cst_29 : f32 to vector<8x256xf32>
    %170 = arith.addf %169, %168 : vector<8x256xf32>
    %171 = arith.divf %169, %170 : vector<8x256xf32>
    %172 = math.tanh %166 : vector<8x256xf32>
    %173 = vector.extract_strided_slice %171 {offsets = [0, 64], sizes = [8, 64], strides = [1, 1]} : vector<8x256xf32> to vector<8x64xf32>
    %174 = arith.mulf %173, %158 : vector<8x64xf32>
    %175 = vector.extract_strided_slice %171 {offsets = [0, 0], sizes = [8, 64], strides = [1, 1]} : vector<8x256xf32> to vector<8x64xf32>
    %176 = vector.extract_strided_slice %172 {offsets = [0, 128], sizes = [8, 64], strides = [1, 1]} : vector<8x256xf32> to vector<8x64xf32>
    %177 = arith.mulf %175, %176 : vector<8x64xf32>
    %178 = arith.addf %174, %177 : vector<8x64xf32>
    %c264 = arith.constant 264 : index
    %c0_30 = arith.constant 0 : index
    %179 = vector.load %arg4[%c264, %c0_30] : memref<792x256xf32, #tpu.memory_space<vmem>>, vector<64x32xf32>
    %cst_31 = arith.constant dense<0.000000e+00> : vector<8x32xf32>
    %180 = tpu.matmul %178, %179, %cst_31 {dimension_numbers = #tpu.dot_dimension_numbers<[1], [0], [0], [1], [0, 0, 1, 1], [], []>} : vector<8x64xf32>, vector<64x32xf32>, vector<8x32xf32> -> vector<8x32xf32>
    %c328 = arith.constant 328 : index
    %c0_32 = arith.constant 0 : index
    %181 = vector.load %arg4[%c328, %c0_32] : memref<792x256xf32, #tpu.memory_space<vmem>>, vector<1x32xf32>
    %182 = vector.broadcast %181 : vector<1x32xf32> to vector<8x32xf32>
    %183 = arith.addf %180, %182 : vector<8x32xf32>
    %184 = vector.extract_strided_slice %183 {offsets = [0, 0], sizes = [8, 16], strides = [1, 1]} : vector<8x32xf32> to vector<8x16xf32>
    %185 = vector.extract_strided_slice %183 {offsets = [0, 16], sizes = [8, 16], strides = [1, 1]} : vector<8x32xf32> to vector<8x16xf32>
    %c0_33 = arith.constant 0 : index
    %c0_34 = arith.constant 0 : index
    %186 = vector.load %arg3[%c0_33, %c0_34] : memref<8x16xf32, #tpu.memory_space<vmem>>, vector<8x16xf32>
    %cst_35 = arith.constant 5.000000e-01 : f32
    %187 = vector.broadcast %cst_35 : f32 to vector<8x16xf32>
    %188 = arith.mulf %187, %185 : vector<8x16xf32>
    %189 = math.exp %188 : vector<8x16xf32>
    %190 = arith.mulf %186, %189 : vector<8x16xf32>
    %191 = arith.addf %190, %184 : vector<8x16xf32>
    %192 = tpu.iota {dimensions = array<i32: 0>} : vector<8x16xi32>
    %c2_i32 = arith.constant 2 : i32
    %193 = vector.broadcast %c2_i32 : i32 to vector<8x16xi32>
    %194 = arith.cmpi slt, %192, %193 : vector<8x16xi32>
    %195 = arith.mulf %184, %184 : vector<8x16xf32>
    %196 = arith.subf %185, %195 : vector<8x16xf32>
    %197 = math.exp %185 : vector<8x16xf32>
    %198 = arith.subf %196, %197 : vector<8x16xf32>
    %cst_36 = arith.constant 1.000000e+00 : f32
    %199 = vector.broadcast %cst_36 : f32 to vector<8x16xf32>
    %200 = arith.addf %198, %199 : vector<8x16xf32>
    %cst_37 = arith.constant 0.000000e+00 : f32
    %201 = vector.broadcast %cst_37 : f32 to vector<8x16xf32>
    %202 = arith.select %194, %200, %201 : vector<8x16xi1>, vector<8x16xf32>
    %203 = vector.shape_cast %202 : vector<8x16xf32> to vector<1x8x16xf32>
    %cst_38 = arith.constant dense<0.000000e+00> : vector<1xf32>
    %204 = vector.multi_reduction <add>, %203, %cst_38 [1, 2] : vector<1x8x16xf32> to vector<1xf32>
    %205 = vector.shape_cast %204 : vector<1xf32> to vector<1x1x1xf32>
    %206 = vector.extract %205[0, 0, 0] : f32 from vector<1x1x1xf32>
    %cst_39 = arith.constant -5.000000e-01 : f32
    %207 = arith.mulf %cst_39, %206 : f32
    %cst_40 = arith.constant 5.000000e-01 : f32
    %208 = arith.mulf %207, %cst_40 : f32
    %c336 = arith.constant 336 : index
    %c0_41 = arith.constant 0 : index
    %209 = vector.load %arg4[%c336, %c0_41] : memref<792x256xf32, #tpu.memory_space<vmem>>, vector<16x48xf32>
    %cst_42 = arith.constant dense<0.000000e+00> : vector<8x48xf32>
    %210 = tpu.matmul %191, %209, %cst_42 {dimension_numbers = #tpu.dot_dimension_numbers<[1], [0], [0], [1], [0, 0, 1, 1], [], []>} : vector<8x16xf32>, vector<16x48xf32>, vector<8x48xf32> -> vector<8x48xf32>
    %c0_43 = arith.constant 0 : index
    %c0_44 = arith.constant 0 : index
    %211 = vector.load %arg2[%c0_43, %c0_44] : memref<72x48xf32, #tpu.memory_space<vmem>>, vector<72x48xf32>
    %212 = vector.shape_cast %210 : vector<8x48xf32> to vector<1x8x48xf32>
    %213 = vector.shape_cast %212 : vector<1x8x48xf32> to vector<1x8x48xf32>
    %214 = vector.broadcast %213 : vector<1x8x48xf32> to vector<9x8x48xf32>
    %215 = vector.shape_cast %214 : vector<9x8x48xf32> to vector<72x48xf32>
    %216 = arith.addf %211, %215 : vector<72x48xf32>
    %cst_45 = arith.constant 0.000000e+00 : f32
    %217 = vector.broadcast %cst_45 : f32 to vector<16x48xf32>
    %218 = tpu.concatenate %217, %216 in 0 : vector<16x48xf32>, vector<72x48xf32> -> vector<88x48xf32>
    %c496 = arith.constant 496 : index
    %c0_46 = arith.constant 0 : index
    %219 = vector.load %arg4[%c496, %c0_46] : memref<792x256xf32, #tpu.memory_space<vmem>>, vector<1x32xf32>
    %220 = vector.shape_cast %219 : vector<1x32xf32> to vector<1x32xf32>
    %221 = vector.broadcast %220 : vector<1x32xf32> to vector<72x32xf32>
    %222 = vector.extract_strided_slice %218 {offsets = [0, 0], sizes = [72, 48], strides = [1, 1]} : vector<88x48xf32> to vector<72x48xf32>
    %c352 = arith.constant 352 : index
    %c0_47 = arith.constant 0 : index
    %223 = vector.load %arg4[%c352, %c0_47] : memref<792x256xf32, #tpu.memory_space<vmem>>, vector<48x32xf32>
    %cst_48 = arith.constant dense<0.000000e+00> : vector<72x32xf32>
    %224 = tpu.matmul %222, %223, %cst_48 {dimension_numbers = #tpu.dot_dimension_numbers<[1], [0], [0], [1], [0, 0, 1, 1], [], []>} : vector<72x48xf32>, vector<48x32xf32>, vector<72x32xf32> -> vector<72x32xf32>
    %225 = arith.addf %221, %224 : vector<72x32xf32>
    %226 = vector.extract_strided_slice %218 {offsets = [8, 0], sizes = [72, 48], strides = [1, 1]} : vector<88x48xf32> to vector<72x48xf32>
    %c400 = arith.constant 400 : index
    %c0_49 = arith.constant 0 : index
    %227 = vector.load %arg4[%c400, %c0_49] : memref<792x256xf32, #tpu.memory_space<vmem>>, vector<48x32xf32>
    %cst_50 = arith.constant dense<0.000000e+00> : vector<72x32xf32>
    %228 = tpu.matmul %226, %227, %cst_50 {dimension_numbers = #tpu.dot_dimension_numbers<[1], [0], [0], [1], [0, 0, 1, 1], [], []>} : vector<72x48xf32>, vector<48x32xf32>, vector<72x32xf32> -> vector<72x32xf32>
    %229 = arith.addf %225, %228 : vector<72x32xf32>
    %230 = vector.extract_strided_slice %218 {offsets = [16, 0], sizes = [72, 48], strides = [1, 1]} : vector<88x48xf32> to vector<72x48xf32>
    %c448 = arith.constant 448 : index
    %c0_51 = arith.constant 0 : index
    %231 = vector.load %arg4[%c448, %c0_51] : memref<792x256xf32, #tpu.memory_space<vmem>>, vector<48x32xf32>
    %cst_52 = arith.constant dense<0.000000e+00> : vector<72x32xf32>
    %232 = tpu.matmul %230, %231, %cst_52 {dimension_numbers = #tpu.dot_dimension_numbers<[1], [0], [0], [1], [0, 0, 1, 1], [], []>} : vector<72x48xf32>, vector<48x32xf32>, vector<72x32xf32> -> vector<72x32xf32>
    %233 = arith.addf %229, %232 : vector<72x32xf32>
    %cst_53 = arith.constant 0.000000e+00 : f32
    %234 = vector.broadcast %cst_53 : f32 to vector<72x32xf32>
    %235 = arith.maximumf %233, %234 : vector<72x32xf32>
    %cst_54 = arith.constant 0.000000e+00 : f32
    %236 = vector.broadcast %cst_54 : f32 to vector<32x32xf32>
    %237 = tpu.concatenate %236, %235 in 0 : vector<32x32xf32>, vector<72x32xf32> -> vector<104x32xf32>
    %c600 = arith.constant 600 : index
    %c0_55 = arith.constant 0 : index
    %238 = vector.load %arg4[%c600, %c0_55] : memref<792x256xf32, #tpu.memory_space<vmem>>, vector<1x40xf32>
    %239 = vector.shape_cast %238 : vector<1x40xf32> to vector<1x40xf32>
    %240 = vector.broadcast %239 : vector<1x40xf32> to vector<72x40xf32>
    %241 = vector.extract_strided_slice %237 {offsets = [0, 0], sizes = [72, 32], strides = [1, 1]} : vector<104x32xf32> to vector<72x32xf32>
    %c504 = arith.constant 504 : index
    %c0_56 = arith.constant 0 : index
    %242 = vector.load %arg4[%c504, %c0_56] : memref<792x256xf32, #tpu.memory_space<vmem>>, vector<32x40xf32>
    %cst_57 = arith.constant dense<0.000000e+00> : vector<72x40xf32>
    %243 = tpu.matmul %241, %242, %cst_57 {dimension_numbers = #tpu.dot_dimension_numbers<[1], [0], [0], [1], [0, 0, 1, 1], [], []>} : vector<72x32xf32>, vector<32x40xf32>, vector<72x40xf32> -> vector<72x40xf32>
    %244 = arith.addf %240, %243 : vector<72x40xf32>
    %245 = vector.extract_strided_slice %237 {offsets = [16, 0], sizes = [72, 32], strides = [1, 1]} : vector<104x32xf32> to vector<72x32xf32>
    %c536 = arith.constant 536 : index
    %c0_58 = arith.constant 0 : index
    %246 = vector.load %arg4[%c536, %c0_58] : memref<792x256xf32, #tpu.memory_space<vmem>>, vector<32x40xf32>
    %cst_59 = arith.constant dense<0.000000e+00> : vector<72x40xf32>
    %247 = tpu.matmul %245, %246, %cst_59 {dimension_numbers = #tpu.dot_dimension_numbers<[1], [0], [0], [1], [0, 0, 1, 1], [], []>} : vector<72x32xf32>, vector<32x40xf32>, vector<72x40xf32> -> vector<72x40xf32>
    %248 = arith.addf %244, %247 : vector<72x40xf32>
    %249 = vector.extract_strided_slice %237 {offsets = [32, 0], sizes = [72, 32], strides = [1, 1]} : vector<104x32xf32> to vector<72x32xf32>
    %c568 = arith.constant 568 : index
    %c0_60 = arith.constant 0 : index
    %250 = vector.load %arg4[%c568, %c0_60] : memref<792x256xf32, #tpu.memory_space<vmem>>, vector<32x40xf32>
    %cst_61 = arith.constant dense<0.000000e+00> : vector<72x40xf32>
    %251 = tpu.matmul %249, %250, %cst_61 {dimension_numbers = #tpu.dot_dimension_numbers<[1], [0], [0], [1], [0, 0, 1, 1], [], []>} : vector<72x32xf32>, vector<32x40xf32>, vector<72x40xf32> -> vector<72x40xf32>
    %252 = arith.addf %248, %251 : vector<72x40xf32>
    %cst_62 = arith.constant 0.000000e+00 : f32
    %253 = vector.broadcast %cst_62 : f32 to vector<72x40xf32>
    %254 = arith.maximumf %252, %253 : vector<72x40xf32>
    %cst_63 = arith.constant 0.000000e+00 : f32
    %255 = vector.broadcast %cst_63 : f32 to vector<64x40xf32>
    %256 = tpu.concatenate %255, %254 in 0 : vector<64x40xf32>, vector<72x40xf32> -> vector<136x40xf32>
    %c728 = arith.constant 728 : index
    %c0_64 = arith.constant 0 : index
    %257 = vector.load %arg4[%c728, %c0_64] : memref<792x256xf32, #tpu.memory_space<vmem>>, vector<1x48xf32>
    %258 = vector.shape_cast %257 : vector<1x48xf32> to vector<1x48xf32>
    %259 = vector.broadcast %258 : vector<1x48xf32> to vector<72x48xf32>
    %260 = vector.extract_strided_slice %256 {offsets = [0, 0], sizes = [72, 40], strides = [1, 1]} : vector<136x40xf32> to vector<72x40xf32>
    %c608 = arith.constant 608 : index
    %c0_65 = arith.constant 0 : index
    %261 = vector.load %arg4[%c608, %c0_65] : memref<792x256xf32, #tpu.memory_space<vmem>>, vector<40x48xf32>
    %cst_66 = arith.constant dense<0.000000e+00> : vector<72x48xf32>
    %262 = tpu.matmul %260, %261, %cst_66 {dimension_numbers = #tpu.dot_dimension_numbers<[1], [0], [0], [1], [0, 0, 1, 1], [], []>} : vector<72x40xf32>, vector<40x48xf32>, vector<72x48xf32> -> vector<72x48xf32>
    %263 = arith.addf %259, %262 : vector<72x48xf32>
    %264 = vector.extract_strided_slice %256 {offsets = [32, 0], sizes = [72, 40], strides = [1, 1]} : vector<136x40xf32> to vector<72x40xf32>
    %c648 = arith.constant 648 : index
    %c0_67 = arith.constant 0 : index
    %265 = vector.load %arg4[%c648, %c0_67] : memref<792x256xf32, #tpu.memory_space<vmem>>, vector<40x48xf32>
    %cst_68 = arith.constant dense<0.000000e+00> : vector<72x48xf32>
    %266 = tpu.matmul %264, %265, %cst_68 {dimension_numbers = #tpu.dot_dimension_numbers<[1], [0], [0], [1], [0, 0, 1, 1], [], []>} : vector<72x40xf32>, vector<40x48xf32>, vector<72x48xf32> -> vector<72x48xf32>
    %267 = arith.addf %263, %266 : vector<72x48xf32>
    %268 = vector.extract_strided_slice %256 {offsets = [64, 0], sizes = [72, 40], strides = [1, 1]} : vector<136x40xf32> to vector<72x40xf32>
    %c688 = arith.constant 688 : index
    %c0_69 = arith.constant 0 : index
    %269 = vector.load %arg4[%c688, %c0_69] : memref<792x256xf32, #tpu.memory_space<vmem>>, vector<40x48xf32>
    %cst_70 = arith.constant dense<0.000000e+00> : vector<72x48xf32>
    %270 = tpu.matmul %268, %269, %cst_70 {dimension_numbers = #tpu.dot_dimension_numbers<[1], [0], [0], [1], [0, 0, 1, 1], [], []>} : vector<72x40xf32>, vector<40x48xf32>, vector<72x48xf32> -> vector<72x48xf32>
    %271 = arith.addf %267, %270 : vector<72x48xf32>
    %cst_71 = arith.constant 0.000000e+00 : f32
    %272 = vector.broadcast %cst_71 : f32 to vector<72x48xf32>
    %273 = arith.maximumf %271, %272 : vector<72x48xf32>
    %c736 = arith.constant 736 : index
    %c0_72 = arith.constant 0 : index
    %274 = vector.load %arg4[%c736, %c0_72] : memref<792x256xf32, #tpu.memory_space<vmem>>, vector<48x128xf32>
    %cst_73 = arith.constant dense<0.000000e+00> : vector<72x128xf32>
    %275 = tpu.matmul %273, %274, %cst_73 {dimension_numbers = #tpu.dot_dimension_numbers<[1], [0], [0], [1], [0, 0, 1, 1], [], []>} : vector<72x48xf32>, vector<48x128xf32>, vector<72x128xf32> -> vector<72x128xf32>
    %c784 = arith.constant 784 : index
    %c0_74 = arith.constant 0 : index
    %276 = vector.load %arg4[%c784, %c0_74] : memref<792x256xf32, #tpu.memory_space<vmem>>, vector<1x128xf32>
    %277 = vector.broadcast %276 : vector<1x128xf32> to vector<72x128xf32>
    %278 = arith.addf %275, %277 : vector<72x128xf32>
    %279 = tpu.iota {dimensions = array<i32: 0>} : vector<72x128xi32>
    %280 = tpu.iota {dimensions = array<i32: 1>} : vector<72x128xi32>
    %c0_i32 = arith.constant 0 : i32
    %281 = vector.broadcast %c0_i32 : i32 to vector<72x128xi32>
    %282 = arith.cmpi eq, %279, %281 : vector<72x128xi32>
    %c127_i32 = arith.constant 127 : i32
    %283 = vector.broadcast %c127_i32 : i32 to vector<72x128xi32>
    %284 = arith.cmpi eq, %280, %283 : vector<72x128xi32>
    %285 = arith.andi %282, %284 : vector<72x128xi1>
    %286 = vector.broadcast %208 : f32 to vector<72x128xf32>
    %287 = arith.select %285, %286, %278 : vector<72x128xi1>, vector<72x128xf32>
    %c0_75 = arith.constant 0 : index
    %c0_76 = arith.constant 0 : index
    %288 = vector.load %arg5[%c0_75, %c0_76] : memref<72x128xf32, #tpu.memory_space<vmem>>, vector<72x128xf32>
    tpu.vector_store %arg5[%c0_75, %c0_76], %287 {strides = array<i32>} : memref<72x128xf32, #tpu.memory_space<vmem>>, vector<72x128xf32>,
    return
  }
}

</mosaic_0001>

<bundles_post_ra>
// kernel: rvae_forward.1
= control target key start
LH: loop header
LB: loop body
LE: loop exit
PB: predicated region body
PF: predicated region fallthrough
CT: control target
= control target key end

     0   :  { %vm40_vm0 = vcmask 785408   ;;  %s4285_s23 = smov 64   ;;  %s4286_s24 = smov 96   ;;  %v4287_v44 = vmov 0.0   ;;  %vm282_vm1 = vcmask 261120   ;;  %vm420_vm2 = vcmask 523264   ;;  %s5419_s4 = inlined_call_operand.vmem [shape: f32[792,256], index: 4, kind: input, shape index: {}]   ;;  %s5420_s1 = inlined_call_operand.vmem [shape: f32[64,96], index: 1, kind: input, shape index: {}]   ;;  %s5421_s0 = inlined_call_operand.vmem [shape: f32[64,64], index: 0, kind: input, shape index: {}]   ;;  %s5422_s3 = inlined_call_operand.vmem [shape: f32[8,16], index: 3, kind: input, shape index: {}]   ;;  %s5423_s2 = inlined_call_operand.vmem [shape: f32[72,48], index: 2, kind: input, shape index: {}]   ;;  %s5424_s5 = inlined_call_operand.vmem [shape: f32[72,128], index: 5, kind: output, shape index: {}]  }
   0x1   :  { %v28_v0 = vld [vmem:[%s5419_s4] sm:$0xff]  ;;  %v29_v1 = vld [vmem:[%s5419_s4 + $0x10] sm:$0xff]  ;;  %v21_v19 = vld [vmem:[%s5420_s1 + $0x8] sm:$0xff]  ;;  %371 = vmatprep.mubr.f32.mxu1 %v4287_v44  ;;  %s4288_s25 = smov 32   ;;  %vm4290_vm3 = vmmov 0   ;;  %s4291_s28 = smov 16  }
   0x2   :  { %v30_v2 = vld [vmem:[%s5419_s4 + $0x20] sm:$0xff]  ;;  %v3751_v3 = vpack.c.bf16 %v29_v1, %v28_v0  ;;  %v31_v4 = vld [vmem:[%s5419_s4 + $0x30] sm:$0xff]  ;;  %v23_v21 = vld [vmem:[%s5420_s1 + $0x18] sm:$0xff]  ;;  %s4292_s29 = smov 112   ;;  %vm1489_vm5 = vcmask 130048   ;;  %vm1602_vm6 = vcmask 392192  }
   0x3   :  { %v3755_v5 = vpack.c.bf16 %v31_v4, %v30_v2  ;;  %v32_v6 = vld [vmem:[%s5419_s4 + $0x40] sm:$0xff]  ;;  %v33_v7 = vld [vmem:[%s5419_s4 + $0x50] sm:$0xff]  ;;  %v25_v23 = vld [vmem:[%s5420_s1 + $0x28] sm:$0xff]  ;;  %vm2424_vm7 = vcmask 326656  }
   0x4   :  { %3752 = vmatprep.subr.bf16.mxu0 %v3751_v3  ;;  %v20_v8 = vld [vmem:[%s5420_s1] sm:$0xff]  ;;  %v3759_v9 = vpack.c.bf16 %v33_v7, %v32_v6  ;;  %v35_v11 = vld [vmem:[%s5419_s4 + $0x70] sm:$0xff]  ;;  %v27_v25 = vld [vmem:[%s5420_s1 + $0x38] sm:$0xff] }
   0x5   :  { %3754 = vmatpush3.bf16.msra.mxu0 %v3751_v3  ;;  %3341 = vmatprep.mubr.msk.f32.mxu0 %vm40_vm0, %v20_v8  ;;  %v34_v10 = vld [vmem:[%s5419_s4 + $0x60] sm:$0xff]  ;;  %v37_v14 = vld [vmem:[%s5419_s4 + $0x90] sm:$0xff]  ;;  %v275_v26 = vld [vmem:[%s5419_s4 + $0x148] sm:$0xff] }
   0x6   :  { %3756 = vmatprep.subr.bf16.mxu0 %v3755_v5  ;;  %v3763_v12 = vpack.c.bf16 %v35_v11, %v34_v10  ;;  %v36_v13 = vld [vmem:[%s5419_s4 + $0x80] sm:$0xff]  ;;  %v39_v17 = vld [vmem:[%s5419_s4 + $0xb0] sm:$0xff]  ;;  %v277_v27 = vld [vmem:[%s5419_s4 + $0x158] sm:$0xff] }
   0x7   :  { %v3767_v15 = vpack.c.bf16 %v37_v14, %v36_v13  ;;  %v38_v16 = vld [vmem:[%s5419_s4 + $0xa0] sm:$0xff]  ;;  %v22_v20 = vld [vmem:[%s5420_s1 + $0x10] sm:$0xff]  ;;  %v3775_v28 = vpack.c.bf16 %v277_v27, %v275_v26  ;;  %v279_v32 = vld [vmem:[%s5419_s4 + $0x168] sm:$0xff] }
   0x8   :  { %v3771_v18 = vpack.c.bf16 %v39_v17, %v38_v16  ;;  %v24_v22 = vld [vmem:[%s5420_s1 + $0x20] sm:$0xff]  ;;  %v26_v24 = vld [vmem:[%s5420_s1 + $0x30] sm:$0xff]  ;;  %v281_v33 = vld [vmem:[%s5419_s4 + $0x178] sm:$0xff] }
   0x9   :  { %3758 = vmatpush3.bf16.msra.mxu0 %v3755_v5  ;;  %v274_v29 = vld [vmem:[%s5419_s4 + $0x140] sm:$0xff]  ;;  %v276_v30 = vld [vmem:[%s5419_s4 + $0x150] sm:$0xff]  ;;  %3776 = vmatprep.subr.bf16.mxu1 %v3775_v28  ;;  %v3779_v35 = vpack.c.bf16 %v281_v33, %v279_v32  ;;  %v259_v46 = vld [vmem:[%s5419_s4 + $0xc8] sm:$0xff] }
   0xa   :  { %3760 = vmatprep.subr.bf16.mxu0 %v3759_v9  ;;  %v3777_v31 = vpack.c.bf16 %v276_v30, %v274_v29  ;;  %v278_v36 = vld [vmem:[%s5419_s4 + $0x160] sm:$0xff]  ;;  %v280_v37 = vld [vmem:[%s5419_s4 + $0x170] sm:$0xff]  ;;  %v261_v47 = vld [vmem:[%s5419_s4 + $0xd8] sm:$0xff] }
   0xb   :  { %v3781_v40 = vpack.c.bf16 %v280_v37, %v278_v36  ;;  %v3783_v49 = vpack.c.bf16 %v261_v47, %v259_v46  ;;  %v258_v2 = vld [vmem:[%s5419_s4 + $0xc0] sm:$0xff]  ;;  %v260_v3 = vld [vmem:[%s5419_s4 + $0xd0] sm:$0xff]  ;;  %v263_v6 = vld [vmem:[%s5419_s4 + $0xe8] sm:$0xff] }
   0xc   :  { %3778 = vmatpush1.bf16.msra.mxu1 %v3777_v31  ;;  %v265_v7 = vld [vmem:[%s5419_s4 + $0xf8] sm:$0xff]  ;;  %v262_v13 = vld [vmem:[%s5419_s4 + $0xe0] sm:$0xff]  ;;  %v264_v14 = vld [vmem:[%s5419_s4 + $0xf0] sm:$0xff] }
   0xd   :  { %3762 = vmatpush3.bf16.msra.mxu0 %v3759_v9  ;;  %3780 = vmatprep.subr.bf16.mxu1 %v3779_v35  ;;  %v3785_v9 = vpack.c.bf16 %v260_v3, %v258_v2  ;;  %v267_v17 = vld [vmem:[%s5419_s4 + $0x108] sm:$0xff]  ;;  %v273_v28 = vld [vmem:[%s5419_s4 + $0x138] sm:$0xff]  ;;  %v272_v35 = vld [vmem:[%s5419_s4 + $0x130] sm:$0xff] }
   0xe   :  { %3764 = vmatprep.subr.bf16.mxu0 %v3763_v12  ;;  %v271_v27 = vld [vmem:[%s5419_s4 + $0x128] sm:$0xff] }
   0xf   :  { %v3795_v33 = vpack.c.bf16 %v273_v28, %v271_v27  ;;  %v254_v28 = vld [vmem:[%s5421_s0 + $0x20] sm:$0xff] }
  0x10   :  { %3782 = vmatpush1.bf16.msra.mxu1 %v3781_v40 }
  0x11   :  { %3766 = vmatpush3.bf16.msra.mxu0 %v3763_v12  ;;  %3784 = vmatprep.subr.bf16.mxu1 %v3783_v49  ;;  %v3787_v12 = vpack.c.bf16 %v265_v7, %v263_v6  ;;  %v565_v6 = vld [vmem:[%s5419_s4 + $0x1b8] sm:$0xff]  ;;  %v250_v7 = vld [vmem:[%s5421_s0] sm:$0xff] }
  0x12   :  { %3768 = vmatprep.subr.bf16.mxu0 %v3767_v15 }
  0x15   :  { %3770 = vmatpush3.bf16.msra.mxu0 %v3767_v15 }
  0x16   :  { %3772 = vmatprep.subr.bf16.mxu0 %v3771_v18 }
  0x19   :  { %3774 = vmatpush3.bf16.msra.mxu0 %v3771_v18  ;;  %v269_v18 = vld [vmem:[%s5419_s4 + $0x118] sm:$0xff] }
  0x1c   :  { %3342 = vmatmul.mubr.msk.f32.vlgmr.msra.gmra.mrb[0].mxu0 %vm40_vm0, %v21_v19  ;;  %v3789_v19 = vpack.c.bf16 %v264_v14, %v262_v13  ;;  %v569_v13 = vld [vmem:[%s5419_s4 + $0x1d8] sm:$0xff]  ;;  %v251_v14 = vld [vmem:[%s5421_s0 + $0x8] sm:$0xff] }
  0x1d   :  { %3344 = vmatprep.mubr.msk.f32.mxu0 %vm40_vm0, %v22_v20 }
  0x20   :  { %3345 = vmatmul.mubr.msk.f32.gmra.mrb[2].mxu0 %vm40_vm0, %v23_v21 }
  0x21   :  { %3347 = vmatprep.mubr.msk.f32.mxu0 %vm40_vm0, %v24_v22  ;;  %v3791_v22 = vpack.c.bf16 %v269_v18, %v267_v17  ;;  %v566_v17 = vld [vmem:[%s5419_s4 + $0x1c0] sm:$0xff]  ;;  %v568_v18 = vld [vmem:[%s5419_s4 + $0x1d0] sm:$0xff] }
  0x24   :  { %3348 = vmatmul.mubr.msk.f32.gmra.mrb[4].mxu0 %vm40_vm0, %v25_v23  ;;  %v266_v23 = vld [vmem:[%s5419_s4 + $0x100] sm:$0xff] }
  0x25   :  { %3350 = vmatprep.mubr.msk.f32.mxu0 %vm40_vm0, %v26_v24  ;;  %v268_v24 = vld [vmem:[%s5419_s4 + $0x110] sm:$0xff] }
  0x26   :  { %v3793_v30 = vpack.c.bf16 %v268_v24, %v266_v23  ;;  %v570_v24 = vld [vmem:[%s5419_s4 + $0x1e0] sm:$0xff] }
  0x28   :  { %3351 = vmatmul.mubr.msk.f32.gmra.mrb[6].mxu0 %vm40_vm0, %v27_v25 }
  0x29   :  { %3369 = vmatprep.mubr.msk.f32.mxu0 %vm4290_vm3, %v4287_v44 }
  0xef   :  { %v3343_v34 = vpop.f32.mrb[0].mxu0 }
  0xf0   :  { %v4415_v38 = vmax.f32 %v3343_v34, 0.0  ;;  %v131_v39 = vpop.f32.mrb[1].mxu0  ;;  %v270_v34 = vld [vmem:[%s5419_s4 + $0x120] sm:$0xff] }
  0xf1   :  { %v170_v42 = vmax.f32 %v131_v39, 0.0  ;;  %v561_v39 = vld [vmem:[%s5419_s4 + $0x198] sm:$0xff] }
  0xf2   :  { %204 = vrot.lane.b32.xlu0 %v4415_v38, %s4285_s23  ;;  %180 = vrot.lane.b32.xlu1 %v4415_v38, %s4286_s24 }
  0xf3   :  { %v3346_v41 = vpop.f32.mrb[2].mxu0 }
  0xf4   :  { %v141_v43 = vpop.f32.mrb[3].mxu0  ;;  %v4439_v53 = vmax.f32 %v3346_v41, 0.0  ;;  %v3797_v41 = vpack.c.bf16 %v272_v35, %v270_v34  ;;  %v3050_v35 = vld [vmem:[%s5419_s4 + $0x200] ss:$8 sm:$0x3] }
  0xf5   :  { %v4425_v45 = vmax.f32 %v141_v43, 0.0 }
  0xf6   :  { %228 = vrot.lane.b32.xlu0 %v4415_v38, %s4288_s25  ;;  %226 = vrot.lane.b32.xlu1 %v170_v42, %s4288_s25 }
  0xf7   :  { %v3349_v48 = vpop.f32.mrb[4].mxu0 }
  0xf8   :  { %v151_v50 = vpop.f32.mrb[5].mxu0  ;;  %v4455_v55 = vmax.f32 %v3349_v48, 0.0 }
  0xf9   :  { %v4445_v54 = vmax.f32 %v151_v50, 0.0 }
  0xfa   :  { %178 = vrot.lane.b32.xlu0 %v170_v42, %s4286_s24  ;;  %182 = vrot.lane.b32.xlu1 %v4425_v45, %s4286_s24 }
  0xfb   :  { %v3352_v51 = vpop.f32.mrb[6].mxu0 }
  0xfc   :  { %v161_v52 = vpop.f32.mrb[7].mxu0  ;;  %v4471_v57 = vmax.f32 %v3352_v51, 0.0 }
  0xfd   :  { %v4461_v56 = vmax.f32 %v161_v52, 0.0 }
  0xfe   :  { %202 = vrot.lane.b32.xlu0 %v170_v42, %s4285_s23  ;;  %206 = vrot.lane.b32.xlu1 %v4425_v45, %s4285_s23 }
 0x102   :  { %184 = vrot.lane.b32.xlu0 %v4439_v53, %s4286_s24  ;;  %230 = vrot.lane.b32.xlu1 %v4425_v45, %s4288_s25 }
 0x106   :  { %208 = vrot.lane.b32.xlu0 %v4439_v53, %s4285_s23  ;;  %186 = vrot.lane.b32.xlu1 %v4445_v54, %s4286_s24 }
 0x10a   :  { %232 = vrot.lane.b32.xlu0 %v4439_v53, %s4288_s25  ;;  %210 = vrot.lane.b32.xlu1 %v4445_v54, %s4285_s23 }
 0x10e   :  { %188 = vrot.lane.b32.xlu0 %v4455_v55, %s4286_s24  ;;  %234 = vrot.lane.b32.xlu1 %v4445_v54, %s4288_s25 }
 0x112   :  { %212 = vrot.lane.b32.xlu0 %v4455_v55, %s4285_s23  ;;  %190 = vrot.lane.b32.xlu1 %v4461_v56, %s4286_s24 }
 0x116   :  { %236 = vrot.lane.b32.xlu0 %v4455_v55, %s4288_s25  ;;  %214 = vrot.lane.b32.xlu1 %v4461_v56, %s4285_s23 }
 0x11a   :  { %192 = vrot.lane.b32.xlu0 %v4471_v57, %s4286_s24  ;;  %238 = vrot.lane.b32.xlu1 %v4461_v56, %s4288_s25 }
 0x11e   :  { %216 = vrot.lane.b32.xlu0 %v4471_v57, %s4285_s23  ;;  %240 = vrot.lane.b32.xlu1 %v4471_v57, %s4288_s25 }
 0x164   :  { %v205_v58 = vpop.permute.xlu0 %204  ;;  %v181_v59 = vpop.permute.xlu1 %180 }
 0x165   :  { %v195_v0 = vmax.f32 %v4415_v38, %v181_v59  ;;  %v559_v38 = vld [vmem:[%s5419_s4 + $0x188] sm:$0xff] }
 0x167   :  { %v219_v10 = vmax.f32 %v195_v0, %v205_v58 }
 0x168   :  { %v229_v60 = vpop.permute.xlu0 %228  ;;  %v227_v61 = vpop.permute.xlu1 %226 }
 0x169   :  { %v243_v20 = vmax.f32 %v219_v10, %v229_v60  ;;  %v562_v10 = vld [vmem:[%s5419_s4 + $0x1a0] sm:$0xff] }
 0x16c   :  { %v179_v62 = vpop.permute.xlu0 %178  ;;  %v183_v63 = vpop.permute.xlu1 %182 }
 0x16d   :  { %v194_v1 = vmax.f32 %v170_v42, %v179_v62  ;;  %v196_v21 = vmax.f32 %v4425_v45, %v183_v63  ;;  %v4539_v45 = vpack.c.bf16 %v561_v39, %v559_v38 }
 0x170   :  { %v203_v4 = vpop.permute.xlu0 %202  ;;  %v207_v5 = vpop.permute.xlu1 %206 }
 0x171   :  { %v218_v8 = vmax.f32 %v194_v1, %v203_v4  ;;  %v220_v29 = vmax.f32 %v196_v21, %v207_v5  ;;  %v560_v5 = vld [vmem:[%s5419_s4 + $0x190] sm:$0xff] }
 0x172   :  { %v252_v21 = vld [vmem:[%s5421_s0 + $0x10] sm:$0xff] }
 0x173   :  { %v242_v11 = vmax.f32 %v218_v8, %v227_v61 }
 0x174   :  { %v185_v15 = vpop.permute.xlu0 %184  ;;  %v231_v16 = vpop.permute.xlu1 %230 }
 0x175   :  { %3034 = vmatmul.mubr.msk.f32.vlgmr.msra.gmra.mrb[0].mxu1 %vm282_vm1, %v242_v11  ;;  %v197_v31 = vmax.f32 %v4439_v53, %v185_v15  ;;  %v244_v32 = vmax.f32 %v220_v29, %v231_v16  ;;  %v564_v11 = vld [vmem:[%s5419_s4 + $0x1b0] sm:$0xff]  ;;  %v255_v29 = vld [vmem:[%s5421_s0 + $0x28] sm:$0xff] }
 0x176   :  { %377 = vmatprep.mubr.f32.mxu1 %v4287_v44  ;;  %3786 = vmatpush1.bf16.msra.mxu1 %v3785_v9  ;;  %v4592_v15 = vpack.c.bf16 %v564_v11, %v562_v10 }
 0x177   :  { %3788 = vmatprep.subr.bf16.mxu1 %v3787_v12  ;;  %v567_v12 = vld [vmem:[%s5419_s4 + $0x1c8] sm:$0xff] }
 0x178   :  { %v209_v25 = vpop.permute.xlu0 %208  ;;  %v187_v26 = vpop.permute.xlu1 %186  ;;  %v4595_v16 = vpack.c.bf16 %v569_v13, %v567_v12 }
 0x179   :  { %3035 = vmatmul.mubr.msk.f32.gmra.mrb[2].mxu1 %vm282_vm1, %v243_v20  ;;  %v221_v40 = vmax.f32 %v197_v31, %v209_v25  ;;  %v198_v42 = vmax.f32 %v4445_v54, %v187_v26  ;;  %v573_v20 = vld [vmem:[%s5419_s4 + $0x1f8] sm:$0xff]  ;;  %v572_v25 = vld [vmem:[%s5419_s4 + $0x1f0] sm:$0xff] }
 0x17a   :  { %383 = vmatprep.mubr.f32.mxu1 %v4287_v44  ;;  %3790 = vmatpush1.bf16.msra.mxu1 %v3789_v19  ;;  %v571_v19 = vld [vmem:[%s5419_s4 + $0x1e8] sm:$0xff]  ;;  %v253_v26 = vld [vmem:[%s5421_s0 + $0x18] sm:$0xff]  ;;  %v4632_v27 = vpack.c.bf16 %v572_v25, %v570_v24 }
 0x17b   :  { %3792 = vmatprep.subr.bf16.mxu1 %v3791_v22  ;;  %v4615_v22 = vpack.c.bf16 %v568_v18, %v566_v17  ;;  %v4618_v23 = vpack.c.bf16 %v573_v20, %v571_v19  ;;  %v257_v31 = vld [vmem:[%s5421_s0 + $0x38] sm:$0xff] }
 0x17c   :  { %v233_v36 = vpop.permute.xlu0 %232  ;;  %v211_v37 = vpop.permute.xlu1 %210 }
 0x17d   :  { %3036 = vmatmul.mubr.msk.f32.gmra.mrb[4].mxu1 %vm282_vm1, %v244_v32  ;;  %v245_v43 = vmax.f32 %v221_v40, %v233_v36  ;;  %v222_v48 = vmax.f32 %v198_v42, %v211_v37  ;;  %v651_v32 = vlaneseq }
 0x17e   :  { %389 = vmatprep.mubr.f32.mxu1 %v4287_v44  ;;  %3794 = vmatpush1.bf16.msra.mxu1 %v3793_v30  ;;  %v256_v30 = vld [vmem:[%s5421_s0 + $0x30] sm:$0xff] }
 0x17f   :  { %3796 = vmatprep.subr.bf16.mxu1 %v3795_v33  ;;  %v4670_v33 = vshrl.u32 %v651_v32, 7 }
 0x180   :  { %v189_v46 = vpop.permute.xlu0 %188  ;;  %v235_v47 = vpop.permute.xlu1 %234 }
 0x181   :  { %3037 = vmatmul.mubr.msk.f32.gmra.mrb[6].mxu1 %vm282_vm1, %v245_v43  ;;  %v246_v49 = vmax.f32 %v222_v48, %v235_v47  ;;  %v199_v52 = vmax.f32 %v4455_v55, %v189_v46  ;;  %v653_v34 = vsub.s32 0, %v4670_v33  ;;  %vm1473_vm4 = vcmp.lt.s32.totalorder %v4670_v33, 2 }
 0x182   :  { %395 = vmatprep.mubr.f32.mxu1 %v4287_v44  ;;  %3798 = vmatpush1.bf16.msra.mxu1 %v3797_v41  ;;  %v657_v41 = vsub.s32 1, %v4670_v33  ;;  %vm2984_vm8 = vcmp.eq.s32.totalorder %v4670_v33, 0 }
 0x183   :  { %3800 = vmatprep.subr.bf16.mxu1 %v4539_v45  ;;  %v4676_v36 = vrot.slane %v3050_v35, %v653_v34 }
 0x184   :  { %v213_v50 = vpop.permute.xlu0 %212  ;;  %v191_v51 = vpop.permute.xlu1 %190  ;;  %v4680_v42 = vrot.slane %v3050_v35, %v657_v41 }
 0x185   :  { %3038 = vmatmul.mubr.msk.f32.gmra.mrb[8].mxu1 %vm282_vm1, %v246_v49  ;;  %v223_v53 = vmax.f32 %v199_v52, %v213_v50  ;;  %v200_v59 = vmax.f32 %v4461_v56, %v191_v51  ;;  %v558_v56 = vld [vmem:[%s5419_s4 + $0x180] sm:$0xff] }
 0x186   :  { %401 = vmatprep.mubr.f32.mxu1 %v4287_v44  ;;  %v4570_v8 = vpack.c.bf16 %v560_v5, %v558_v56 }
 0x188   :  { %v237_v54 = vpop.permute.xlu0 %236  ;;  %v215_v58 = vpop.permute.xlu1 %214 }
 0x189   :  { %v247_v60 = vmax.f32 %v223_v53, %v237_v54  ;;  %v224_v61 = vmax.f32 %v200_v59, %v215_v58 }
 0x18b   :  { %3039 = vmatmul.mubr.msk.f32.gmra.mrb[10].mxu1 %vm282_vm1, %v247_v60 }
 0x18c   :  { %v193_v62 = vpop.permute.xlu0 %192  ;;  %v239_v63 = vpop.permute.xlu1 %238  ;;  %407 = vmatprep.mubr.f32.mxu1 %v4287_v44 }
 0x18d   :  { %v248_v0 = vmax.f32 %v224_v61, %v239_v63  ;;  %v201_v55 = vmax.f32 %v4471_v57, %v193_v62  ;;  %v563_v57 = vld [vmem:[%s5419_s4 + $0x1a8] sm:$0xff] }
 0x18e   :  { %v4572_v9 = vpack.c.bf16 %v565_v6, %v563_v57 }
 0x18f   :  { %3040 = vmatmul.mubr.msk.f32.gmra.mrb[12].mxu1 %vm282_vm1, %v248_v0 }
 0x190   :  { %v217_v1 = vpop.permute.xlu0 %216  ;;  %413 = vmatprep.mubr.f32.mxu1 %v4287_v44  ;;  %v241_v3 = vpop.permute.xlu1 %240 }
 0x191   :  { %v225_v2 = vmax.f32 %v201_v55, %v217_v1 }
 0x193   :  { %v249_v4 = vmax.f32 %v225_v2, %v241_v3 }
 0x195   :  { %3041 = vmatmul.mubr.msk.f32.gmra.mrb[14].mxu1 %vm282_vm1, %v249_v4 }
 0x196   :  { %509 = vmatprep.mubr.f32.mxu1 %v4287_v44 }
 0x199   :  { %3042 = vmatmul.mubr.msk.f32.vlgmr.msra.gmra.mrb[0].mxu1 %vm420_vm2, %v250_v7 }
 0x19a   :  { %3802 = vmatpush1.bf16.msra.mxu1 %v4570_v8  ;;  %515 = vmatprep.mubr.f32.mxu1 %v4287_v44 }
 0x19b   :  { %3804 = vmatprep.subr.bf16.mxu1 %v4572_v9 }
 0x19d   :  { %3043 = vmatmul.mubr.msk.f32.gmra.mrb[2].mxu1 %vm420_vm2, %v251_v14 }
 0x19e   :  { %521 = vmatprep.mubr.f32.mxu1 %v4287_v44  ;;  %3806 = vmatpush1.bf16.msra.mxu1 %v4592_v15 }
 0x19f   :  { %3808 = vmatprep.subr.bf16.mxu1 %v4595_v16 }
 0x1a1   :  { %3044 = vmatmul.mubr.msk.f32.gmra.mrb[4].mxu1 %vm420_vm2, %v252_v21 }
 0x1a2   :  { %527 = vmatprep.mubr.f32.mxu1 %v4287_v44  ;;  %3810 = vmatpush1.bf16.msra.mxu1 %v4615_v22 }
 0x1a3   :  { %3812 = vmatprep.subr.bf16.mxu1 %v4618_v23 }
 0x1a5   :  { %3045 = vmatmul.mubr.msk.f32.gmra.mrb[6].mxu1 %vm420_vm2, %v253_v26 }
 0x1a6   :  { %533 = vmatprep.mubr.f32.mxu1 %v4287_v44  ;;  %3814 = vmatpush1.bf16.msra.mxu1 %v4632_v27 }
 0x1a7   :  { %3816 = vmatprep.subr.bf16.mxu1 %v4539_v45 }
 0x1a9   :  { %3046 = vmatmul.mubr.msk.f32.gmra.mrb[8].mxu1 %vm420_vm2, %v254_v28 }
 0x1aa   :  { %539 = vmatprep.mubr.f32.mxu1 %v4287_v44 }
 0x1ad   :  { %3047 = vmatmul.mubr.msk.f32.gmra.mrb[10].mxu1 %vm420_vm2, %v255_v29 }
 0x1ae   :  { %545 = vmatprep.mubr.f32.mxu1 %v4287_v44 }
 0x1b1   :  { %3048 = vmatmul.mubr.msk.f32.gmra.mrb[12].mxu1 %vm420_vm2, %v256_v30 }
 0x1b2   :  { %551 = vmatprep.mubr.f32.mxu1 %v4287_v44 }
 0x1b5   :  { %3049 = vmatmul.mubr.msk.f32.gmra.mrb[14].mxu1 %vm420_vm2, %v257_v31 }
 0x1b6   :  { %643 = vmatprep.mubr.f32.mxu1 %v4287_v44 }
 0x1b9   :  { %644 = vmatmul.mubr.f32.vlgmr.msra.gmra.mrb[0].mxu1 %v4287_v44 }
 0x1ba   :  { %3818 = vmatpush1.bf16.msra.mxu1 %v4570_v8  ;;  %754 = vmatprep.mubr.f32.mxu1 %v4287_v44 }
 0x1bb   :  { %3820 = vmatprep.subr.bf16.mxu1 %v4572_v9 }
 0x1be   :  { %3822 = vmatpush1.bf16.msra.mxu1 %v4592_v15 }
 0x1bf   :  { %3824 = vmatprep.subr.bf16.mxu1 %v4595_v16 }
 0x1c2   :  { %3826 = vmatpush1.bf16.msra.mxu1 %v4615_v22 }
 0x1c3   :  { %3828 = vmatprep.subr.bf16.mxu1 %v4618_v23 }
 0x1c6   :  { %3830 = vmatpush1.bf16.msra.mxu1 %v4632_v27 }
 0x1c7   :  { %3832 = vmatprep.subr.bf16.mxu1 %v4539_v45 }
 0x28c   :  { %v645_v37 = vpop.f32.mrb[0].mxu1 }
 0x28d   :  { %v661_v38 = vadd.f32 %v4676_v36, %v645_v37  ;;  %v647_v39 = vpop.f32.mrb[1].mxu1 }
 0x28e   :  { %v662_v43 = vadd.f32 %v4680_v42, %v647_v39 }
 0x28f   :  { %v3051_v40 = vmul.f32 -1.442695, %v661_v38 }
 0x290   :  { %v3052_v51 = vmul.f32 -1.442695, %v662_v43 }
 0x291   :  { %4191 = vpow2.f32 %v3051_v40 }
 0x292   :  { %4193 = vtanh.f32 %v662_v43 }
 0x29b   :  { %v4192_v46 = vpop.eup %4191 }
 0x29c   :  { %v669_v47 = vadd.f32 1.0, %v4192_v46  ;;  %v4194_v48 = vpop.eup %4193 }
 0x29e   :  { %4195 = vrcp.f32 %v669_v47 }
 0x29f   :  { %4197 = vpow2.f32 %v3052_v51 }
 0x2a8   :  { %v4196_v49 = vpop.eup %4195 }
 0x2a9   :  { %v677_v50 = vmul.f32 %v4196_v49, %v4194_v48  ;;  %v4198_v52 = vpop.eup %4197  ;;  %v676_v54 = vmul.f32 0.0, %v4196_v49 }
 0x2aa   :  { %v670_v53 = vadd.f32 1.0, %v4198_v52 }
 0x2ab   :  { %679 = vrot.lane.b32.xlu0 %v677_v50, %s4285_s23 }
 0x2ac   :  { %4199 = vrcp.f32 %v670_v53 }
 0x2b6   :  { %v4200_v60 = vpop.eup %4199 }
 0x31d   :  { %v680_v58 = vpop.permute.xlu0 %679 }
 0x31e   :  { %v682_v59 = vadd.f32 %v680_v58, %v676_v54 }
 0x320   :  { %4201 = vtanh.f32 %v682_v59 }
 0x32a   :  { %v4202_v61 = vpop.eup %4201 }
 0x32b   :  { %v684_v62 = vmul.f32 %v4202_v61, %v4200_v60 }
 0x32d   :  { %686 = vrot.lane.b32.xlu1 %v684_v62, %s4285_s23 }
 0x39f   :  { %v687_v63 = vpop.permute.xlu1 %686 }
 0x3a0   :  { %3053 = vmatmul.mubr.msk.f32.vlgmr.msra.gmra.mrb[2].mxu1 %vm420_vm2, %v687_v63 }
 0x3a1   :  { %3834 = vmatpush1.bf16.msra.mxu1 %v4570_v8  ;;  %854 = vmatprep.mubr.f32.mxu1 %v4287_v44 }
 0x3a2   :  { %3836 = vmatprep.subr.bf16.mxu1 %v4572_v9 }
 0x3a5   :  { %3838 = vmatpush1.bf16.msra.mxu1 %v4592_v15 }
 0x3a6   :  { %3840 = vmatprep.subr.bf16.mxu1 %v4595_v16 }
 0x3a9   :  { %3842 = vmatpush1.bf16.msra.mxu1 %v4615_v22 }
 0x3aa   :  { %3844 = vmatprep.subr.bf16.mxu1 %v4618_v23 }
 0x3ad   :  { %3846 = vmatpush1.bf16.msra.mxu1 %v4632_v27 }
 0x3ae   :  { %3848 = vmatprep.subr.bf16.mxu1 %v4539_v45 }
 0x473   :  { %v756_v0 = vpop.f32.mrb[2].mxu1 }
 0x474   :  { %v761_v55 = vadd.f32 %v756_v0, %v4676_v36  ;;  %v758_v1 = vpop.f32.mrb[3].mxu1 }
 0x475   :  { %v762_v3 = vadd.f32 %v758_v1, %v4680_v42 }
 0x476   :  { %v3054_v2 = vmul.f32 -1.442695, %v761_v55 }
 0x477   :  { %v3055_v7 = vmul.f32 -1.442695, %v762_v3 }
 0x478   :  { %4203 = vpow2.f32 %v3054_v2 }
 0x479   :  { %4205 = vtanh.f32 %v762_v3 }
 0x482   :  { %v4204_v4 = vpop.eup %4203 }
 0x483   :  { %v769_v56 = vadd.f32 1.0, %v4204_v4  ;;  %v4206_v5 = vpop.eup %4205 }
 0x485   :  { %4207 = vrcp.f32 %v769_v56 }
 0x486   :  { %4209 = vpow2.f32 %v3055_v7 }
 0x48f   :  { %v4208_v57 = vpop.eup %4207 }
 0x490   :  { %v777_v6 = vmul.f32 %v4208_v57, %v4206_v5  ;;  %v4210_v10 = vpop.eup %4209  ;;  %v776_v12 = vmul.f32 %v4208_v57, %v682_v59 }
 0x491   :  { %v770_v11 = vadd.f32 1.0, %v4210_v10 }
 0x492   :  { %779 = vrot.lane.b32.xlu0 %v777_v6, %s4285_s23 }
 0x493   :  { %4211 = vrcp.f32 %v770_v11 }
 0x49d   :  { %v4212_v17 = vpop.eup %4211 }
 0x504   :  { %v780_v13 = vpop.permute.xlu0 %779 }
 0x505   :  { %v782_v14 = vadd.f32 %v780_v13, %v776_v12 }
 0x507   :  { %4213 = vtanh.f32 %v782_v14 }
 0x511   :  { %v4214_v18 = vpop.eup %4213 }
 0x512   :  { %v784_v19 = vmul.f32 %v4214_v18, %v4212_v17 }
 0x514   :  { %786 = vrot.lane.b32.xlu1 %v784_v19, %s4285_s23 }
 0x586   :  { %v787_v20 = vpop.permute.xlu1 %786 }
 0x587   :  { %3056 = vmatmul.mubr.msk.f32.vlgmr.msra.gmra.mrb[4].mxu1 %vm420_vm2, %v787_v20 }
 0x588   :  { %3850 = vmatpush1.bf16.msra.mxu1 %v4570_v8  ;;  %954 = vmatprep.mubr.f32.mxu1 %v4287_v44 }
 0x589   :  { %3852 = vmatprep.subr.bf16.mxu1 %v4572_v9 }
 0x58c   :  { %3854 = vmatpush1.bf16.msra.mxu1 %v4592_v15 }
 0x58d   :  { %3856 = vmatprep.subr.bf16.mxu1 %v4595_v16 }
 0x590   :  { %3858 = vmatpush1.bf16.msra.mxu1 %v4615_v22 }
 0x591   :  { %3860 = vmatprep.subr.bf16.mxu1 %v4618_v23 }
 0x594   :  { %3862 = vmatpush1.bf16.msra.mxu1 %v4632_v27 }
 0x595   :  { %3864 = vmatprep.subr.bf16.mxu1 %v4539_v45 }
 0x65a   :  { %v856_v21 = vpop.f32.mrb[4].mxu1 }
 0x65b   :  { %v861_v24 = vadd.f32 %v856_v21, %v4676_v36  ;;  %v858_v25 = vpop.f32.mrb[5].mxu1 }
 0x65c   :  { %v862_v28 = vadd.f32 %v858_v25, %v4680_v42 }
 0x65d   :  { %v3057_v26 = vmul.f32 -1.442695, %v861_v24 }
 0x65e   :  { %v3058_v37 = vmul.f32 -1.442695, %v862_v28 }
 0x65f   :  { %4215 = vpow2.f32 %v3057_v26 }
 0x660   :  { %4217 = vtanh.f32 %v862_v28 }
 0x669   :  { %v4216_v29 = vpop.eup %4215 }
 0x66a   :  { %v869_v30 = vadd.f32 1.0, %v4216_v29  ;;  %v4218_v31 = vpop.eup %4217 }
 0x66c   :  { %4219 = vrcp.f32 %v869_v30 }
 0x66d   :  { %4221 = vpow2.f32 %v3058_v37 }
 0x676   :  { %v4220_v34 = vpop.eup %4219 }
 0x677   :  { %v877_v35 = vmul.f32 %v4220_v34, %v4218_v31  ;;  %v4222_v38 = vpop.eup %4221  ;;  %v876_v40 = vmul.f32 %v4220_v34, %v782_v14 }
 0x678   :  { %v870_v39 = vadd.f32 1.0, %v4222_v38 }
 0x679   :  { %879 = vrot.lane.b32.xlu0 %v877_v35, %s4285_s23 }
 0x67a   :  { %4223 = vrcp.f32 %v870_v39 }
 0x684   :  { %v4224_v46 = vpop.eup %4223 }
 0x6eb   :  { %v880_v41 = vpop.permute.xlu0 %879 }
 0x6ec   :  { %v882_v43 = vadd.f32 %v880_v41, %v876_v40 }
 0x6ee   :  { %4225 = vtanh.f32 %v882_v43 }
 0x6f8   :  { %v4226_v47 = vpop.eup %4225 }
 0x6f9   :  { %v884_v48 = vmul.f32 %v4226_v47, %v4224_v46 }
 0x6fb   :  { %886 = vrot.lane.b32.xlu1 %v884_v48, %s4285_s23 }
 0x76d   :  { %v887_v49 = vpop.permute.xlu1 %886 }
 0x76e   :  { %3059 = vmatmul.mubr.msk.f32.vlgmr.msra.gmra.mrb[6].mxu1 %vm420_vm2, %v887_v49 }
 0x76f   :  { %3866 = vmatpush1.bf16.msra.mxu1 %v4570_v8  ;;  %1054 = vmatprep.mubr.f32.mxu1 %v4287_v44 }
 0x770   :  { %3868 = vmatprep.subr.bf16.mxu1 %v4572_v9 }
 0x773   :  { %3870 = vmatpush1.bf16.msra.mxu1 %v4592_v15 }
 0x774   :  { %3872 = vmatprep.subr.bf16.mxu1 %v4595_v16 }
 0x777   :  { %3874 = vmatpush1.bf16.msra.mxu1 %v4615_v22 }
 0x778   :  { %3876 = vmatprep.subr.bf16.mxu1 %v4618_v23 }
 0x77b   :  { %3878 = vmatpush1.bf16.msra.mxu1 %v4632_v27 }
 0x77c   :  { %3880 = vmatprep.subr.bf16.mxu1 %v4539_v45 }
 0x841   :  { %v956_v50 = vpop.f32.mrb[6].mxu1 }
 0x842   :  { %v961_v51 = vadd.f32 %v956_v50, %v4676_v36  ;;  %v958_v52 = vpop.f32.mrb[7].mxu1 }
 0x843   :  { %v962_v54 = vadd.f32 %v958_v52, %v4680_v42 }
 0x844   :  { %v3060_v53 = vmul.f32 -1.442695, %v961_v51 }
 0x845   :  { %v3061_v63 = vmul.f32 -1.442695, %v962_v54 }
 0x846   :  { %4227 = vpow2.f32 %v3060_v53 }
 0x847   :  { %4229 = vtanh.f32 %v962_v54 }
 0x850   :  { %v4228_v58 = vpop.eup %4227 }
 0x851   :  { %v969_v59 = vadd.f32 1.0, %v4228_v58  ;;  %v4230_v60 = vpop.eup %4229 }
 0x853   :  { %4231 = vrcp.f32 %v969_v59 }
 0x854   :  { %4233 = vpow2.f32 %v3061_v63 }
 0x85d   :  { %v4232_v61 = vpop.eup %4231 }
 0x85e   :  { %v977_v62 = vmul.f32 %v4232_v61, %v4230_v60  ;;  %v4234_v0 = vpop.eup %4233  ;;  %v976_v1 = vmul.f32 %v4232_v61, %v882_v43 }
 0x85f   :  { %v970_v55 = vadd.f32 1.0, %v4234_v0 }
 0x860   :  { %979 = vrot.lane.b32.xlu0 %v977_v62, %s4285_s23 }
 0x861   :  { %4235 = vrcp.f32 %v970_v55 }
 0x86b   :  { %v4236_v4 = vpop.eup %4235 }
 0x8d2   :  { %v980_v2 = vpop.permute.xlu0 %979 }
 0x8d3   :  { %v982_v3 = vadd.f32 %v980_v2, %v976_v1 }
 0x8d5   :  { %4237 = vtanh.f32 %v982_v3 }
 0x8df   :  { %v4238_v56 = vpop.eup %4237 }
 0x8e0   :  { %v984_v5 = vmul.f32 %v4238_v56, %v4236_v4 }
 0x8e2   :  { %986 = vrot.lane.b32.xlu1 %v984_v5, %s4285_s23 }
 0x954   :  { %v987_v57 = vpop.permute.xlu1 %986 }
 0x955   :  { %3062 = vmatmul.mubr.msk.f32.vlgmr.msra.gmra.mrb[8].mxu1 %vm420_vm2, %v987_v57 }
 0x956   :  { %3882 = vmatpush1.bf16.msra.mxu1 %v4570_v8  ;;  %1154 = vmatprep.mubr.f32.mxu1 %v4287_v44 }
 0x957   :  { %3884 = vmatprep.subr.bf16.mxu1 %v4572_v9 }
 0x95a   :  { %3886 = vmatpush1.bf16.msra.mxu1 %v4592_v15 }
 0x95b   :  { %3888 = vmatprep.subr.bf16.mxu1 %v4595_v16 }
 0x95e   :  { %3890 = vmatpush1.bf16.msra.mxu1 %v4615_v22 }
 0x95f   :  { %3892 = vmatprep.subr.bf16.mxu1 %v4618_v23 }
 0x962   :  { %3894 = vmatpush1.bf16.msra.mxu1 %v4632_v27 }
 0x963   :  { %3896 = vmatprep.subr.bf16.mxu1 %v4539_v45 }
 0xa28   :  { %v1056_v6 = vpop.f32.mrb[8].mxu1 }
 0xa29   :  { %v1061_v7 = vadd.f32 %v1056_v6, %v4676_v36  ;;  %v1058_v10 = vpop.f32.mrb[9].mxu1 }
 0xa2a   :  { %v1062_v12 = vadd.f32 %v1058_v10, %v4680_v42 }
 0xa2b   :  { %v3063_v11 = vmul.f32 -1.442695, %v1061_v7 }
 0xa2c   :  { %v3064_v20 = vmul.f32 -1.442695, %v1062_v12 }
 0xa2d   :  { %4239 = vpow2.f32 %v3063_v11 }
 0xa2e   :  { %4241 = vtanh.f32 %v1062_v12 }
 0xa37   :  { %v4240_v13 = vpop.eup %4239 }
 0xa38   :  { %v1069_v14 = vadd.f32 1.0, %v4240_v13  ;;  %v4242_v17 = vpop.eup %4241 }
 0xa3a   :  { %4243 = vrcp.f32 %v1069_v14 }
 0xa3b   :  { %4245 = vpow2.f32 %v3064_v20  ;;  %v4289_v20 = vmov 0.0|0.0  }
 0xa3c   :  { %3927 = vmatprep.subr.bf16.mxu0 %v4289_v20 }
 0xa44   :  { %v4244_v18 = vpop.eup %4243 }
 0xa45   :  { %v1077_v19 = vmul.f32 %v4244_v18, %v4242_v17  ;;  %v4246_v21 = vpop.eup %4245  ;;  %v1076_v25 = vmul.f32 %v4244_v18, %v982_v3  ;;  %v1377_v18 = vld [vmem:[%s5419_s4 + $0x210] sm:$0xff] }
 0xa46   :  { %v1070_v24 = vadd.f32 1.0, %v4246_v21  ;;  %v1380_v21 = vld [vmem:[%s5419_s4 + $0x240] sm:$0xff] }
 0xa47   :  { %1079 = vrot.lane.b32.xlu0 %v1077_v19, %s4285_s23  ;;  %v1378_v19 = vld [vmem:[%s5419_s4 + $0x220] sm:$0xff] }
 0xa48   :  { %4247 = vrcp.f32 %v1070_v24 }
 0xa52   :  { %v4248_v29 = vpop.eup %4247 }
 0xab9   :  { %v1080_v26 = vpop.permute.xlu0 %1079 }
 0xaba   :  { %v1082_v28 = vadd.f32 %v1080_v26, %v1076_v25  ;;  %v1381_v25 = vld [vmem:[%s5419_s4 + $0x250] sm:$0xff]  ;;  %v1382_v26 = vld [vmem:[%s5419_s4 + $0x260] sm:$0xff] }
 0xabc   :  { %4249 = vtanh.f32 %v1082_v28 }
 0xac6   :  { %v4250_v30 = vpop.eup %4249 }
 0xac7   :  { %v1084_v31 = vmul.f32 %v4250_v30, %v4248_v29  ;;  %v3934_v29 = vpack.c.bf16 %v1382_v26, %v1381_v25  ;;  %v1578_v25 = vld [vmem:[%s5423_s2 + $0x8] sm:$0xff] }
 0xac9   :  { %1086 = vrot.lane.b32.xlu1 %v1084_v31, %s4285_s23  ;;  %v1383_v31 = vld [vmem:[%s5419_s4 + $0x270] sm:$0xff] }
 0xb3b   :  { %v1087_v34 = vpop.permute.xlu1 %1086 }
 0xb3c   :  { %3065 = vmatmul.mubr.msk.f32.vlgmr.msra.gmra.mrb[10].mxu1 %vm420_vm2, %v1087_v34  ;;  %v1384_v34 = vld [vmem:[%s5419_s4 + $0x280] sm:$0xff] }
 0xb3d   :  { %3898 = vmatpush1.bf16.msra.mxu1 %v4570_v8  ;;  %1254 = vmatprep.mubr.f32.mxu1 %v4287_v44 }
 0xb3e   :  { %3900 = vmatprep.subr.bf16.mxu1 %v4572_v9 }
 0xb41   :  { %3902 = vmatpush1.bf16.msra.mxu1 %v4592_v15 }
 0xb42   :  { %3904 = vmatprep.subr.bf16.mxu1 %v4595_v16 }
 0xb45   :  { %3906 = vmatpush1.bf16.msra.mxu1 %v4615_v22 }
 0xb46   :  { %3908 = vmatprep.subr.bf16.mxu1 %v4618_v23 }
 0xb49   :  { %3910 = vmatpush1.bf16.msra.mxu1 %v4632_v27 }
 0xb4a   :  { %3912 = vmatprep.subr.bf16.mxu1 %v4539_v45 }
 0xc0f   :  { %v1156_v35 = vpop.f32.mrb[10].mxu1 }
 0xc10   :  { %v1161_v37 = vadd.f32 %v1156_v35, %v4676_v36  ;;  %v1158_v38 = vpop.f32.mrb[11].mxu1 }
 0xc11   :  { %v1162_v40 = vadd.f32 %v1158_v38, %v4680_v42 }
 0xc12   :  { %v3066_v39 = vmul.f32 -1.442695, %v1161_v37  ;;  %v3937_v37 = vpack.c.bf16 %v1384_v34, %v1383_v31  ;;  %v1580_v31 = vld [vmem:[%s5423_s2 + $0x18] sm:$0xff] }
 0xc13   :  { %v3067_v49 = vmul.f32 -1.442695, %v1162_v40 }
 0xc14   :  { %4251 = vpow2.f32 %v3066_v39 }
 0xc15   :  { %4253 = vtanh.f32 %v1162_v40 }
 0xc1e   :  { %v4252_v41 = vpop.eup %4251 }
 0xc1f   :  { %v1169_v43 = vadd.f32 1.0, %v4252_v41  ;;  %v4254_v46 = vpop.eup %4253 }
 0xc21   :  { %4255 = vrcp.f32 %v1169_v43  ;;  %v1385_v43 = vld [vmem:[%s5419_s4 + $0x290] ss:$0 sm:$0xff] }
 0xc22   :  { %4257 = vpow2.f32 %v3067_v49 }
 0xc2b   :  { %v4256_v47 = vpop.eup %4255 }
 0xc2c   :  { %v1177_v48 = vmul.f32 %v4256_v47, %v4254_v46  ;;  %v4258_v45 = vpop.eup %4257  ;;  %v1176_v51 = vmul.f32 %v4256_v47, %v1082_v28 }
 0xc2d   :  { %v1170_v50 = vadd.f32 1.0, %v4258_v45 }
 0xc2e   :  { %1179 = vrot.lane.b32.xlu0 %v1177_v48, %s4285_s23 }
 0xc2f   :  { %4259 = vrcp.f32 %v1170_v50  ;;  %v1502_v50 = vld [vmem:[%s5419_s4 + $0x2a0] sm:$0xff] }
 0xc39   :  { %v4260_v54 = vpop.eup %4259 }
 0xca0   :  { %v1180_v52 = vpop.permute.xlu0 %1179 }
 0xca1   :  { %v1182_v53 = vadd.f32 %v1180_v52, %v1176_v51  ;;  %v1503_v51 = vld [vmem:[%s5419_s4 + $0x2b0] sm:$0xff] }
 0xca2   :  { %v3940_v52 = vpack.c.bf16 %v1503_v51, %v1502_v50  ;;  %v1877_v50 = vld [vmem:[%s5419_s4 + $0x3c0] sm:$0xff]  ;;  %v1878_v51 = vld [vmem:[%s5419_s4 + $0x3d0] sm:$0xff] }
 0xca3   :  { %4261 = vtanh.f32 %v1182_v53 }
 0xcad   :  { %v4262_v58 = vpop.eup %4261 }
 0xcae   :  { %v1184_v59 = vmul.f32 %v4262_v58, %v4260_v54 }
 0xcb0   :  { %1186 = vrot.lane.b32.xlu1 %v1184_v59, %s4285_s23  ;;  %v1596_v59 = vld [vmem:[%s5419_s4 + $0x2c0] sm:$0xff] }
 0xd22   :  { %v1187_v60 = vpop.permute.xlu1 %1186 }
 0xd23   :  { %3068 = vmatmul.mubr.msk.f32.vlgmr.msra.gmra.mrb[12].mxu1 %vm420_vm2, %v1187_v60  ;;  %v1597_v60 = vld [vmem:[%s5419_s4 + $0x2d0] sm:$0xff] }
 0xd24   :  { %3914 = vmatpush1.bf16.msra.mxu1 %v4570_v8  ;;  %1354 = vmatprep.mubr.f32.mxu1 %v4287_v44 }
 0xd25   :  { %3916 = vmatprep.subr.bf16.mxu1 %v4572_v9 }
 0xd28   :  { %3918 = vmatpush1.bf16.msra.mxu1 %v4592_v15 }
 0xd29   :  { %3920 = vmatprep.subr.bf16.mxu1 %v4595_v16 }
 0xd2c   :  { %3922 = vmatpush1.bf16.msra.mxu1 %v4615_v22 }
 0xd2d   :  { %3924 = vmatprep.subr.bf16.mxu1 %v4618_v23 }
 0xd30   :  { %3926 = vmatpush1.bf16.msra.mxu1 %v4632_v27 }
 0xd31   :  { %3939 = vmatprep.subr.bf16.mxu1 %v4289_v20 }
 0xdf6   :  { %v1256_v61 = vpop.f32.mrb[12].mxu1 }
 0xdf7   :  { %v1261_v62 = vadd.f32 %v1256_v61, %v4676_v36  ;;  %v1258_v63 = vpop.f32.mrb[13].mxu1  ;;  %v1598_v61 = vld [vmem:[%s5419_s4 + $0x2e0] sm:$0xff] }
 0xdf8   :  { %v1262_v8 = vadd.f32 %v1258_v63, %v4680_v42  ;;  %v1599_v63 = vld [vmem:[%s5419_s4 + $0x2f0] sm:$0xff] }
 0xdf9   :  { %v3069_v0 = vmul.f32 -1.442695, %v1261_v62  ;;  %v3943_v62 = vpack.c.bf16 %v1597_v60, %v1596_v59 }
 0xdfa   :  { %v3070_v22 = vmul.f32 -1.442695, %v1262_v8 }
 0xdfb   :  { %4263 = vpow2.f32 %v3069_v0  ;;  %v3946_v0 = vpack.c.bf16 %v1599_v63, %v1598_v61  ;;  %v1584_v63 = vld [vmem:[%s5423_s2 + $0x38] sm:$0xff] }
 0xdfc   :  { %4265 = vtanh.f32 %v1262_v8 }
 0xe05   :  { %v4264_v55 = vpop.eup %4263 }
 0xe06   :  { %v1269_v9 = vadd.f32 1.0, %v4264_v55  ;;  %v4266_v15 = vpop.eup %4265  ;;  %v1600_v55 = vld [vmem:[%s5419_s4 + $0x300] sm:$0xff] }
 0xe08   :  { %4267 = vrcp.f32 %v1269_v9  ;;  %v1601_v9 = vld [vmem:[%s5419_s4 + $0x310] sm:$0xff] }
 0xe09   :  { %4269 = vpow2.f32 %v3070_v22  ;;  %v3949_v22 = vpack.c.bf16 %v1601_v9, %v1600_v55  ;;  %v2012_v55 = vld [vmem:[%s5419_s4 + $0x400] sm:$0xff] }
 0xe12   :  { %v4268_v16 = vpop.eup %4267 }
 0xe13   :  { %v1277_v1 = vmul.f32 %v4268_v16, %v4266_v15  ;;  %v4270_v23 = vpop.eup %4269  ;;  %v1276_v2 = vmul.f32 %v4268_v16, %v1182_v53 }
 0xe14   :  { %v1270_v27 = vadd.f32 1.0, %v4270_v23  ;;  %v1745_v23 = vld [vmem:[%s5419_s4 + $0x320] sm:$0xff] }
 0xe15   :  { %1279 = vrot.lane.b32.xlu0 %v1277_v1, %s4285_s23 }
 0xe16   :  { %4271 = vrcp.f32 %v1270_v27  ;;  %v1746_v27 = vld [vmem:[%s5419_s4 + $0x330] sm:$0xff] }
 0xe20   :  { %v4272_v56 = vpop.eup %4271 }
 0xe87   :  { %v1280_v3 = vpop.permute.xlu0 %1279 }
 0xe88   :  { %v1282_v4 = vadd.f32 %v1280_v3, %v1276_v2 }
 0xe8a   :  { %4273 = vtanh.f32 %v1282_v4 }
 0xe94   :  { %v4274_v5 = vpop.eup %4273 }
 0xe95   :  { %v1284_v57 = vmul.f32 %v4274_v5, %v4272_v56  ;;  %v1461_v56 = vld [vmem:[%s5422_s3] sm:$0xff] }
 0xe97   :  { %1286 = vrot.lane.b32.xlu1 %v1284_v57, %s4285_s23 }
 0xf09   :  { %v1287_v6 = vpop.permute.xlu1 %1286 }
 0xf0a   :  { %3071 = vmatmul.mubr.msk.f32.vlgmr.msra.gmra.mrb[14].mxu1 %vm420_vm2, %v1287_v6 }
 0xf0b   :  { %3376 = vmatprep.mubr.msk.f32.mxu1 %vm4290_vm3, %v4287_v44  ;;  %3941 = vmatpush3.bf16.msra.mxu1 %v3940_v52 }
 0xf0c   :  { %3987 = vmatprep.subr.bf16.mxu1 %v4289_v20 }
 0xfdd   :  { %v1356_v7 = vpop.f32.mrb[14].mxu1 }
 0xfde   :  { %v1361_v10 = vadd.f32 %v1356_v7, %v4676_v36  ;;  %v1358_v11 = vpop.f32.mrb[15].mxu1  ;;  %v1379_v36 = vld [vmem:[%s5419_s4 + $0x230] sm:$0xff]  ;;  %v1747_v7 = vld [vmem:[%s5419_s4 + $0x340] sm:$0xff] }
 0xfdf   :  { %v1362_v13 = vadd.f32 %v1358_v11, %v4680_v42  ;;  %v3928_v42 = vpack.c.bf16 %v1378_v19, %v1377_v18  ;;  %v3931_v24 = vpack.c.bf16 %v1380_v21, %v1379_v36  ;;  %v1577_v19 = vld [vmem:[%s5423_s2] sm:$0xff] }
 0xfe0   :  { %v3072_v12 = vmul.f32 -1.442695, %v1361_v10  ;;  %v1748_v10 = vld [vmem:[%s5419_s4 + $0x350] sm:$0xff] }
 0xfe1   :  { %3929 = vmatpush3.bf16.msra.mxu0 %v3928_v42  ;;  %v3955_v11 = vpack.c.bf16 %v1748_v10, %v1747_v7  ;;  %v1585_v42 = vld [vmem:[%s5423_s2 + $0x40] sm:$0xff]  ;;  %v2422_v7 = vld [vmem:[%s5419_s4 + $0x4f0] sm:$0xff] }
 0xfe2   :  { %4275 = vpow2.f32 %v3072_v12  ;;  %3930 = vmatprep.subr.bf16.mxu0 %v4289_v20  ;;  %v1749_v12 = vld [vmem:[%s5419_s4 + $0x360] sm:$0xff] }
 0xfe3   :  { %4277 = vtanh.f32 %v1362_v13  ;;  %v1750_v13 = vld [vmem:[%s5419_s4 + $0x370] sm:$0xff] }
 0xfe5   :  { %3932 = vmatpush3.bf16.msra.mxu0 %v3931_v24 }
 0xfe6   :  { %3933 = vmatprep.subr.bf16.mxu0 %v4289_v20 }
 0xfe9   :  { %3935 = vmatpush3.bf16.msra.mxu0 %v3934_v29  ;;  %v1579_v29 = vld [vmem:[%s5423_s2 + $0x10] sm:$0xff] }
 0xfea   :  { %3936 = vmatprep.subr.bf16.mxu0 %v4289_v20 }
 0xfec   :  { %v4276_v14 = vpop.eup %4275 }
 0xfed   :  { %v1366_v17 = vadd.f32 1.0, %v4276_v14  ;;  %v4278_v28 = vpop.eup %4277  ;;  %3938 = vmatpush3.bf16.msra.mxu0 %v3937_v37  ;;  %v3958_v14 = vpack.c.bf16 %v1750_v13, %v1749_v12  ;;  %v2550_v12 = vld [vmem:[%s5419_s4 + $0x520] sm:$0xff] }
 0xfee   :  { %3942 = vmatprep.subr.bf16.mxu0 %v4289_v20  ;;  %v2423_v13 = vld [vmem:[%s5419_s4 + $0x500] sm:$0xff] }
 0xfef   :  { %4279 = vrcp.f32 %v1366_v17 }
 0xff9   :  { %v4280_v30 = vpop.eup %4279 }
 0xffa   :  { %v1371_v35 = vmul.f32 %v4280_v30, %v4278_v28  ;;  %v1370_v38 = vmul.f32 %v4280_v30, %v1282_v4  ;;  %v3952_v4 = vpack.c.bf16 %v1746_v27, %v1745_v23  ;;  %v2152_v23 = vld [vmem:[%s5419_s4 + $0x440] sm:$0xff] }
 0xffc   :  { %1373 = vrot.lane.b32.xlu0 %v1371_v35, %s4285_s23  ;;  %v1581_v35 = vld [vmem:[%s5423_s2 + $0x20] sm:$0xff] }
0x106e   :  { %v1374_v39 = vpop.permute.xlu0 %1373 }
0x106f   :  { %v1376_v40 = vadd.f32 %v1374_v39, %v1370_v38  ;;  %v1582_v38 = vld [vmem:[%s5423_s2 + $0x28] sm:$0xff] }
0x1071   :  { %1387 = vrot.lane.b32.xlu1 %v1376_v40, %s4285_s23  ;;  %v1583_v40 = vld [vmem:[%s5423_s2 + $0x30] sm:$0xff] }
0x10e3   :  { %v1388_v41 = vpop.permute.xlu1 %1387 }
0x10e4   :  { %3370 = vmatmul.mubr.msk.f32.vlgmr.msra.gmra.mrb[8].mxu0 %vm420_vm2, %v1388_v41 }
0x10e5   :  { %3391 = vmatprep.mubr.msk.f32.mxu0 %vm4290_vm3, %v4287_v44  ;;  %3944 = vmatpush3.bf16.msra.mxu0 %v3943_v62 }
0x10e6   :  { %3945 = vmatprep.subr.bf16.mxu0 %v4289_v20 }
0x10e9   :  { %3947 = vmatpush3.bf16.msra.mxu0 %v3946_v0 }
0x10ea   :  { %3948 = vmatprep.subr.bf16.mxu0 %v4289_v20 }
0x10ed   :  { %3950 = vmatpush3.bf16.msra.mxu0 %v3949_v22  ;;  %v2151_v22 = vld [vmem:[%s5419_s4 + $0x430] sm:$0xff] }
0x10ee   :  { %3951 = vmatprep.subr.bf16.mxu0 %v4289_v20  ;;  %v3976_v27 = vpack.c.bf16 %v2152_v23, %v2151_v22 }
0x10f0   :  { %3392 = vmatmul.mubr.f32.vlgmr.msra.gmra.mrb[10].mxu0 %v4287_v44 }
0x10f1   :  { %3953 = vmatpush3.bf16.msra.mxu0 %v3952_v4  ;;  %3394 = vmatprep.mubr.msk.f32.mxu0 %vm4290_vm3, %v4287_v44 }
0x10f2   :  { %3954 = vmatprep.subr.bf16.mxu0 %v4289_v20 }
0x10f4   :  { %3395 = vmatmul.mubr.f32.gmra.mrb[12].mxu0 %v4287_v44 }
0x10f5   :  { %3397 = vmatprep.mubr.msk.f32.mxu0 %vm4290_vm3, %v4287_v44  ;;  %3956 = vmatpush3.bf16.msra.mxu0 %v3955_v11  ;;  %v2549_v11 = vld [vmem:[%s5419_s4 + $0x510] sm:$0xff] }
0x10f6   :  { %3957 = vmatprep.subr.bf16.mxu0 %v4289_v20 }
0x10f9   :  { %3959 = vmatpush3.bf16.msra.mxu0 %v3958_v14  ;;  %v3994_v14 = vpack.c.bf16 %v2550_v12, %v2549_v11  ;;  %v5276_v11 = vld [vmem:[%s5419_s4 + $0x4b0] ss:$0 sm:$0xff] }
0x10fa   :  { %3960 = vmatprep.subr.bf16.mxu0 %v4289_v20 }
0x11b7   :  { %v1457_v46 = vpop.f32.mrb[8].mxu0 }
0x11b8   :  { %v1458_v47 = vadd.f32 %v1457_v46, %v1385_v43  ;;  %v3371_v48 = vpop.f32.mrb[9].mxu0  ;;  %v1873_v43 = vld [vmem:[%s5419_s4 + $0x380] sm:$0xff]  ;;  %v1874_v46 = vld [vmem:[%s5419_s4 + $0x390] sm:$0xff] }
0x11b9   :  { %v1875_v48 = vld [vmem:[%s5419_s4 + $0x3a0] sm:$0xff] }
0x11ba   :  { %v1462_v49 = vmul.f32 0.5, %v1458_v47  ;;  %v1474_v45 = vmul.f32 %v1458_v47, %v1458_v47  ;;  %v1480_v58 = vmul.f32 1.442695, %v1458_v47 }
0x11bc   :  { %v1463_v53 = vmul.f32 1.442695, %v1462_v49  ;;  %1476 = vrot.lane.b32.xlu1 %v1474_v45, %s4291_s28  ;;  %v1876_v49 = vld [vmem:[%s5419_s4 + $0x3b0] sm:$0xff] }
0x11bd   :  { %v3964_v45 = vpack.c.bf16 %v1876_v49, %v1875_v48 }
0x11be   :  { %4281 = vpow2.f32 %v1463_v53  ;;  %v3967_v53 = vpack.c.bf16 %v1878_v51, %v1877_v50  ;;  %v2281_v50 = vld [vmem:[%s5419_s4 + $0x480] sm:$0xff] }
0x11bf   :  { %4283 = vpow2.f32 %v1480_v58 }
0x11c8   :  { %v4282_v54 = vpop.eup %4281 }
0x11c9   :  { %1466 = vrot.lane.b32.xlu0 %v4282_v54, %s4292_s29  ;;  %v4284_v16 = vpop.eup %4283 }
0x122e   :  { %v1477_v8 = vpop.permute.xlu1 %1476 }
0x122f   :  { %v1479_v15 = vsub.f32 %v1458_v47, %v1477_v8  ;;  %v2011_v8 = vld [vmem:[%s5419_s4 + $0x3f0] sm:$0xff] }
0x1230   :  { %v3970_v9 = vpack.c.bf16 %v2012_v55, %v2011_v8 }
0x1231   :  { %v1482_v1 = vsub.f32 %v1479_v15, %v4284_v16  ;;  %v2013_v15 = vld [vmem:[%s5419_s4 + $0x410] sm:$0xff]  ;;  %v2014_v16 = vld [vmem:[%s5419_s4 + $0x420] sm:$0xff] }
0x1233   :  { %v1483_v2 = vadd.f32 1.0, %v1482_v1  ;;  %v3973_v1 = vpack.c.bf16 %v2014_v16, %v2013_v15 }
0x1235   :  { %v1484_v3 = vsel %vm1473_vm4, %v1483_v2, 0.0  ;;  %v2153_v2 = vld [vmem:[%s5419_s4 + $0x450] sm:$0xff] }
0x1236   :  { %1486 = vrot.lane.b32.xlu0 %v1484_v3, %s4292_s29  ;;  %v2154_v3 = vld [vmem:[%s5419_s4 + $0x460] sm:$0xff] }
0x1237   :  { %v3979_v4 = vpack.c.bf16 %v2154_v3, %v2153_v2  ;;  %v2830_v2 = vld [vmem:[%s5419_s4 + $0x5c0] sm:$0xff]  ;;  %v2831_v3 = vld [vmem:[%s5419_s4 + $0x5d0] sm:$0xff] }
0x123b   :  { %v1467_v5 = vpop.permute.xlu0 %1466 }
0x123c   :  { %v1469_v57 = vmul.f32 %v1467_v5, %v1461_v56  ;;  %v2419_v56 = vld [vmem:[%s5419_s4 + $0x4c0] sm:$0xff]  ;;  %v2420_v5 = vld [vmem:[%s5419_s4 + $0x4d0] sm:$0xff] }
0x123e   :  { %v1470_v6 = vadd.f32 %v1469_v57, %v1458_v47  ;;  %v3961_v47 = vpack.c.bf16 %v1874_v46, %v1873_v43  ;;  %v2421_v57 = vld [vmem:[%s5419_s4 + $0x4e0] sm:$0xff] }
0x123f   :  { %v3991_v10 = vpack.c.bf16 %v2422_v7, %v2421_v57  ;;  %v2835_v7 = vld [vmem:[%s5419_s4 + $0x610] sm:$0xff] }
0x1240   :  { %3377 = vmatmul.mubr.msk.f32.vlgmr.msra.gmra.mrb[16].mxu1 %vm1489_vm5, %v1470_v6  ;;  %v3988_v6 = vpack.c.bf16 %v2420_v5, %v2419_v56  ;;  %v4006_v56 = vpack.c.bf16 %v2831_v3, %v2830_v2  ;;  %v2833_v5 = vld [vmem:[%s5419_s4 + $0x5f0] sm:$0xff] }
0x1241   :  { %3611 = vmatprep.mubr.msk.f32.mxu1 %vm4290_vm3, %v4287_v44 }
0x1242   :  { %3989 = vmatpush3.bf16.msra.mxu1 %v3988_v6  ;;  %v2834_v6 = vld [vmem:[%s5419_s4 + $0x600] sm:$0xff] }
0x1243   :  { %3990 = vmatprep.subr.bf16.mxu1 %v4289_v20 }
0x1246   :  { %3992 = vmatpush3.bf16.msra.mxu1 %v3991_v10  ;;  %v4012_v10 = vpack.c.bf16 %v2835_v7, %v2834_v6 }
0x1247   :  { %3609 = vmatprep.subr.mxu1 %v4287_v44 }
0x124a   :  { %3610 = vmatpush3.msra.mxu1 %v2423_v13 }
0x124b   :  { %3993 = vmatprep.subr.bf16.mxu1 %v4289_v20  ;;  %3612 = vmatmul.mubr.f32.vlgmr.msra.gmra.mrb[18].mxu1 %v4287_v44 }
0x124c   :  { %3995 = vmatpush3.bf16.msra.mxu1 %v3994_v14  ;;  %3614 = vmatprep.mubr.msk.f32.mxu1 %vm4290_vm3, %v4287_v44 }
0x124d   :  { %3996 = vmatprep.subr.bf16.mxu1 %v4289_v20 }
0x124f   :  { %3615 = vmatmul.mubr.f32.gmra.mrb[20].mxu1 %v4287_v44 }
0x1250   :  { %3617 = vmatprep.mubr.msk.f32.mxu1 %vm4290_vm3, %v4287_v44 }
0x1253   :  { %3618 = vmatmul.mubr.f32.gmra.mrb[22].mxu1 %v4287_v44 }
0x1254   :  { %3620 = vmatprep.mubr.msk.f32.mxu1 %vm4290_vm3, %v4287_v44 }
0x1257   :  { %3621 = vmatmul.mubr.f32.gmra.mrb[24].mxu1 %v4287_v44 }
0x1258   :  { %3623 = vmatprep.mubr.msk.f32.mxu1 %vm4290_vm3, %v4287_v44 }
0x125b   :  { %3624 = vmatmul.mubr.f32.gmra.mrb[26].mxu1 %v4287_v44 }
0x125c   :  { %3626 = vmatprep.mubr.msk.f32.mxu1 %vm4290_vm3, %v4287_v44 }
0x125f   :  { %3627 = vmatmul.mubr.f32.gmra.mrb[28].mxu1 %v4287_v44 }
0x1260   :  { %3629 = vmatprep.mubr.msk.f32.mxu1 %vm4290_vm3, %v4287_v44 }
0x1263   :  { %3630 = vmatmul.mubr.f32.gmra.mrb[30].mxu1 %v4287_v44 }
0x1264   :  { %3632 = vmatprep.mubr.msk.f32.mxu1 %vm4290_vm3, %v4287_v44 }
0x1267   :  { %3633 = vmatmul.mubr.f32.gmra.mrb[32].mxu1 %v4287_v44 }
0x1268   :  { %3635 = vmatprep.mubr.msk.f32.mxu1 %vm4290_vm3, %v4287_v44 }
0x12a8   :  { %v1487_v17 = vpop.permute.xlu0 %1486 }
0x12a9   :  { %v1490_v18 = vsel %vm1489_vm5, %v1487_v17, 0.0  ;;  %v2551_v17 = vld [vmem:[%s5419_s4 + $0x530] sm:$0xff] }
0x12aa   :  { %1491 = vadd.xlane.f32.xlu1 %v1490_v18  ;;  %v2552_v18 = vld [vmem:[%s5419_s4 + $0x540] sm:$0xff] }
0x1313   :  { %v4877_v36 = vpop.f32.mrb[16].mxu1 }
0x1314   :  { %v3378_v21 = vpop.f32.mrb[17].mxu1  ;;  %v4883_v24 = vadd.f32 %v1577_v19, %v4877_v36  ;;  %v4891_v26 = vadd.f32 %v1585_v42, %v4877_v36  ;;  %v4896_v28 = vadd.f32 %v1578_v25, %v4877_v36  ;;  %v4906_v30 = vadd.f32 %v1579_v29, %v4877_v36  ;;  %v5141_v42 = vld [vmem:[%s5419_s4 + $0x3e0] ss:$0 sm:$0xff] }
0x1315   :  { %v4916_v34 = vadd.f32 %v1580_v31, %v4877_v36  ;;  %v4926_v37 = vadd.f32 %v1581_v35, %v4877_v36  ;;  %v4936_v39 = vadd.f32 %v1582_v38, %v4877_v36  ;;  %v4946_v41 = vadd.f32 %v1583_v40, %v4877_v36 }
0x1316   :  { %3398 = vmatmul.mubr.msk.f32.gmra.mrb[14].mxu0 %vm1602_vm6, %v4883_v24  ;;  %v1593_v0 = vadd.f32 %v1584_v63, %v4877_v36  ;;  %v3997_v19 = vpack.c.bf16 %v2552_v18, %v2551_v17  ;;  %v2553_v36 = vld [vmem:[%s5419_s4 + $0x550] sm:$0xff]  ;;  %v2685_v18 = vld [vmem:[%s5419_s4 + $0x560] sm:$0xff] }
0x1317   :  { %3400 = vmatprep.mubr.msk.f32.mxu0 %vm4290_vm3, %v4287_v44 }
0x1318   :  { %3998 = vmatpush3.bf16.msra.mxu1 %v3997_v19  ;;  %v2686_v19 = vld [vmem:[%s5419_s4 + $0x570] sm:$0xff] }
0x1319   :  { %3646 = vmatprep.subr.mxu1 %v4287_v44 }
0x131a   :  { %3401 = vmatmul.mubr.msk.f32.gmra.mrb[16].mxu0 %vm1602_vm6, %v4896_v28 }
0x131b   :  { %3403 = vmatprep.mubr.msk.f32.mxu0 %vm4290_vm3, %v4287_v44 }
0x131c   :  { %3647 = vmatpush3.msra.mxu1 %v2553_v36 }
0x131d   :  { %3999 = vmatprep.subr.bf16.mxu1 %v4289_v20 }
0x131e   :  { %3404 = vmatmul.mubr.msk.f32.gmra.mrb[18].mxu0 %vm1602_vm6, %v4906_v30 }
0x131f   :  { %3406 = vmatprep.mubr.msk.f32.mxu0 %vm4290_vm3, %v4287_v44 }
0x1322   :  { %3407 = vmatmul.mubr.msk.f32.gmra.mrb[20].mxu0 %vm1602_vm6, %v4916_v34 }
0x1323   :  { %3409 = vmatprep.mubr.msk.f32.mxu0 %vm4290_vm3, %v4287_v44 }
0x1326   :  { %3410 = vmatmul.mubr.msk.f32.gmra.mrb[22].mxu0 %vm1602_vm6, %v4926_v37 }
0x1327   :  { %3412 = vmatprep.mubr.msk.f32.mxu0 %vm4290_vm3, %v4287_v44 }
0x132a   :  { %3413 = vmatmul.mubr.msk.f32.gmra.mrb[24].mxu0 %vm1602_vm6, %v4936_v39 }
0x132b   :  { %3415 = vmatprep.mubr.msk.f32.mxu0 %vm4290_vm3, %v4287_v44 }
0x132e   :  { %3416 = vmatmul.mubr.msk.f32.gmra.mrb[26].mxu0 %vm1602_vm6, %v4946_v41 }
0x132f   :  { %3430 = vmatprep.mubr.msk.f32.mxu0 %vm4290_vm3, %v4287_v44 }
0x1332   :  { %3431 = vmatmul.mubr.f32.vlgmr.msra.gmra.mrb[10].mxu0 %v4287_v44 }
0x1333   :  { %3962 = vmatpush3.bf16.msra.mxu0 %v3961_v47  ;;  %3433 = vmatprep.mubr.msk.f32.mxu0 %vm4290_vm3, %v4287_v44 }
0x1334   :  { %3963 = vmatprep.subr.bf16.mxu0 %v4289_v20 }
0x1336   :  { %3434 = vmatmul.mubr.msk.f32.gmra.mrb[12].mxu0 %vm1602_vm6, %v4883_v24 }
0x1337   :  { %v1492_v52 = vpop.xlane.xlu1 %1491  ;;  %3436 = vmatprep.mubr.msk.f32.mxu0 %vm4290_vm3, %v4287_v44  ;;  %3965 = vmatpush3.bf16.msra.mxu0 %v3964_v45  ;;  %v2280_v45 = vld [vmem:[%s5419_s4 + $0x470] sm:$0xff] }
0x1338   :  { %v1493_v54 = vrot.slane %v1492_v52, 4  ;;  %3966 = vmatprep.subr.bf16.mxu0 %v4289_v20 }
0x133a   :  { %v1494_v58 = vadd.f32 %v1493_v54, %v1492_v52  ;;  %3437 = vmatmul.mubr.msk.f32.gmra.mrb[14].mxu0 %vm1602_vm6, %v4896_v28  ;;  %v2282_v54 = vld [vmem:[%s5419_s4 + $0x490] sm:$0xff] }
0x133b   :  { %3439 = vmatprep.mubr.msk.f32.mxu0 %vm4290_vm3, %v4287_v44  ;;  %3968 = vmatpush3.bf16.msra.mxu0 %v3967_v53  ;;  %v3982_v53 = vpack.c.bf16 %v2281_v50, %v2280_v45 }
0x133c   :  { %v1495_v59 = vrot.slane %v1494_v58, 2  ;;  %3969 = vmatprep.subr.bf16.mxu0 %v4289_v20 }
0x133e   :  { %3440 = vmatmul.mubr.msk.f32.gmra.mrb[16].mxu0 %vm1602_vm6, %v4906_v30  ;;  %v1496_v60 = vadd.f32 %v1495_v59, %v1494_v58  ;;  %v2283_v58 = vld [vmem:[%s5419_s4 + $0x4a0] sm:$0xff] }
0x133f   :  { %3442 = vmatprep.mubr.msk.f32.mxu0 %vm4290_vm3, %v4287_v44 }
0x1340   :  { %v1497_v61 = vrot.slane %v1496_v60, 1 }
0x1342   :  { %3443 = vmatmul.mubr.msk.f32.gmra.mrb[18].mxu0 %vm1602_vm6, %v4916_v34  ;;  %v1498_v62 = vadd.f32 %v1497_v61, %v1496_v60  ;;  %v3985_v61 = vpack.c.bf16 %v2283_v58, %v2282_v54 }
0x1343   :  { %3445 = vmatprep.mubr.msk.f32.mxu0 %vm4290_vm3, %v4287_v44 }
0x1344   :  { %4181 = vpush %v1498_v62 }
0x1346   :  { %3446 = vmatmul.mubr.msk.f32.gmra.mrb[20].mxu0 %vm1602_vm6, %v4926_v37 }
0x1347   :  { %3448 = vmatprep.mubr.msk.f32.mxu0 %vm4290_vm3, %v4287_v44 }
0x134a   :  { %3449 = vmatmul.mubr.msk.f32.gmra.mrb[22].mxu0 %vm1602_vm6, %v4936_v39 }
0x134b   :  { %3451 = vmatprep.mubr.msk.f32.mxu0 %vm4290_vm3, %v4287_v44 }
0x134e   :  { %3452 = vmatmul.mubr.msk.f32.gmra.mrb[24].mxu0 %vm1602_vm6, %v4946_v41 }
0x134f   :  { %3454 = vmatprep.mubr.msk.f32.mxu0 %vm4290_vm3, %v4287_v44 }
0x1352   :  { %3455 = vmatmul.mubr.msk.f32.gmra.mrb[26].mxu0 %vm1602_vm6, %v1593_v0 }
0x1353   :  { %3469 = vmatprep.mubr.msk.f32.mxu0 %vm4290_vm3, %v4287_v44 }
0x1356   :  { %3470 = vmatmul.mubr.msk.f32.vlgmr.msra.gmra.mrb[10].mxu0 %vm1602_vm6, %v4883_v24 }
0x1357   :  { %3472 = vmatprep.mubr.msk.f32.mxu0 %vm4290_vm3, %v4287_v44  ;;  %3971 = vmatpush3.bf16.msra.mxu0 %v3970_v9 }
0x1358   :  { %3972 = vmatprep.subr.bf16.mxu0 %v4289_v20 }
0x135a   :  { %3473 = vmatmul.mubr.msk.f32.gmra.mrb[12].mxu0 %vm1602_vm6, %v4896_v28 }
0x135b   :  { %3475 = vmatprep.mubr.msk.f32.mxu0 %vm4290_vm3, %v4287_v44  ;;  %3974 = vmatpush3.bf16.msra.mxu0 %v3973_v1 }
0x135c   :  { %3975 = vmatprep.subr.bf16.mxu0 %v4289_v20 }
0x135e   :  { %3476 = vmatmul.mubr.msk.f32.gmra.mrb[14].mxu0 %vm1602_vm6, %v4906_v30 }
0x135f   :  { %3478 = vmatprep.mubr.msk.f32.mxu0 %vm4290_vm3, %v4287_v44 }
0x1362   :  { %3479 = vmatmul.mubr.msk.f32.gmra.mrb[16].mxu0 %vm1602_vm6, %v4916_v34 }
0x1363   :  { %3481 = vmatprep.mubr.msk.f32.mxu0 %vm4290_vm3, %v4287_v44 }
0x1366   :  { %3482 = vmatmul.mubr.msk.f32.gmra.mrb[18].mxu0 %vm1602_vm6, %v4926_v37 }
0x1367   :  { %3484 = vmatprep.mubr.msk.f32.mxu0 %vm4290_vm3, %v4287_v44 }
0x136a   :  { %3485 = vmatmul.mubr.msk.f32.gmra.mrb[20].mxu0 %vm1602_vm6, %v4936_v39 }
0x136b   :  { %3487 = vmatprep.mubr.msk.f32.mxu0 %vm4290_vm3, %v4287_v44 }
0x136e   :  { %3488 = vmatmul.mubr.msk.f32.gmra.mrb[22].mxu0 %vm1602_vm6, %v4946_v41 }
0x136f   :  { %3490 = vmatprep.mubr.msk.f32.mxu0 %vm4290_vm3, %v4287_v44 }
0x1372   :  { %3491 = vmatmul.mubr.msk.f32.gmra.mrb[24].mxu0 %vm1602_vm6, %v1593_v0 }
0x1373   :  { %3493 = vmatprep.mubr.msk.f32.mxu0 %vm4290_vm3, %v4287_v44 }
0x1375   :  { %s4182_s16 = spop %4181 }
0x1376   :  { %3494 = vmatmul.mubr.msk.f32.gmra.mrb[26].mxu0 %vm1602_vm6, %v4891_v26  ;;  %s1500_s17 = smul.f32 -0.5, %s4182_s16 }
0x1377   :  { %3504 = vmatprep.mubr.msk.f32.mxu0 %vm4290_vm3, %v4287_v44 }
0x1378   :  { %s1501_s18 = smul.f32 0.5, %s1500_s17 }
0x137a   :  { %3505 = vmatmul.mubr.f32.vlgmr.msra.gmra.mrb[28].mxu0 %v4287_v44 }
0x137b   :  { %3977 = vmatpush3.bf16.msra.mxu0 %v3976_v27  ;;  %3507 = vmatprep.mubr.msk.f32.mxu0 %vm4290_vm3, %v4287_v44 }
0x137c   :  { %3978 = vmatprep.subr.bf16.mxu0 %v4289_v20 }
0x137e   :  { %3508 = vmatmul.mubr.f32.gmra.mrb[30].mxu0 %v4287_v44 }
0x137f   :  { %3510 = vmatprep.mubr.msk.f32.mxu0 %vm4290_vm3, %v4287_v44  ;;  %3980 = vmatpush3.bf16.msra.mxu0 %v3979_v4  ;;  %v2832_v4 = vld [vmem:[%s5419_s4 + $0x5e0] sm:$0xff] }
0x1380   :  { %3981 = vmatprep.subr.bf16.mxu0 %v4289_v20  ;;  %v4009_v57 = vpack.c.bf16 %v2833_v5, %v2832_v4 }
0x1382   :  { %3511 = vmatmul.mubr.f32.gmra.mrb[32].mxu0 %v4287_v44 }
0x1383   :  { %3513 = vmatprep.mubr.msk.f32.mxu0 %vm4290_vm3, %v4287_v44 }
0x1386   :  { %3514 = vmatmul.mubr.f32.gmra.mrb[34].mxu0 %v4287_v44 }
0x1387   :  { %3516 = vmatprep.mubr.msk.f32.mxu0 %vm4290_vm3, %v4287_v44 }
0x1429   :  { %v1948_v21 = vpop.f32.mrb[10].mxu0 }
0x142a   :  { %v4014_v24 = vadd.f32 %v1948_v21, %v5141_v42  ;;  %v3471_v25 = vpop.f32.mrb[11].mxu0  ;;  %v4000_v21 = vpack.c.bf16 %v2686_v19, %v2685_v18 }
0x142b   :  { %v2688_v25 = vld [vmem:[%s5419_s4 + $0x590] sm:$0xff] }
0x142c   :  { %v5149_v26 = vmax.f32 %v4014_v24, 0.0  ;;  %v2687_v24 = vld [vmem:[%s5419_s4 + $0x580] sm:$0xff] }
0x142d   :  { %v1953_v28 = vpop.f32.mrb[12].mxu0 }
0x142e   :  { %v4015_v29 = vadd.f32 %v1953_v28, %v5141_v42  ;;  %v3474_v30 = vpop.f32.mrb[13].mxu0  ;;  %3517 = vmatmul.mubr.msk.f32.gmra.mrb[36].mxu0 %vm282_vm1, %v5149_v26 }
0x142f   :  { %3519 = vmatprep.mubr.msk.f32.mxu0 %vm4290_vm3, %v4287_v44 }
0x1430   :  { %v5159_v31 = vmax.f32 %v4015_v29, 0.0  ;;  %v4003_v29 = vpack.c.bf16 %v2688_v25, %v2687_v24 }
0x1431   :  { %v1958_v34 = vpop.f32.mrb[14].mxu0 }
0x1432   :  { %v4016_v35 = vadd.f32 %v1958_v34, %v5141_v42  ;;  %v3477_v37 = vpop.f32.mrb[15].mxu0  ;;  %3520 = vmatmul.mubr.msk.f32.gmra.mrb[38].mxu0 %vm282_vm1, %v5159_v31  ;;  %v2689_v34 = vld [vmem:[%s5419_s4 + $0x5a0] sm:$0xff] }
0x1433   :  { %3522 = vmatprep.mubr.msk.f32.mxu0 %vm4290_vm3, %v4287_v44 }
0x1434   :  { %v2003_v38 = vmax.f32 %v4016_v35, 0.0 }
0x1435   :  { %v1963_v39 = vpop.f32.mrb[16].mxu0 }
0x1436   :  { %v4017_v40 = vadd.f32 %v1963_v39, %v5141_v42  ;;  %v3480_v41 = vpop.f32.mrb[17].mxu0  ;;  %3523 = vmatmul.mubr.msk.f32.gmra.mrb[40].mxu0 %vm282_vm1, %v2003_v38 }
0x1437   :  { %3525 = vmatprep.mubr.msk.f32.mxu0 %vm4290_vm3, %v4287_v44 }
0x1438   :  { %v2004_v43 = vmax.f32 %v4017_v40, 0.0 }
0x1439   :  { %v1968_v46 = vpop.f32.mrb[18].mxu0 }
0x143a   :  { %v4018_v47 = vadd.f32 %v1968_v46, %v5141_v42  ;;  %v3483_v48 = vpop.f32.mrb[19].mxu0  ;;  %3526 = vmatmul.mubr.msk.f32.gmra.mrb[42].mxu0 %vm282_vm1, %v2004_v43 }
0x143b   :  { %3528 = vmatprep.mubr.msk.f32.mxu0 %vm4290_vm3, %v4287_v44 }
0x143c   :  { %v2005_v49 = vmax.f32 %v4018_v47, 0.0 }
0x143d   :  { %v1973_v51 = vpop.f32.mrb[20].mxu0 }
0x143e   :  { %v3486_v52 = vpop.f32.mrb[21].mxu0  ;;  %3529 = vmatmul.mubr.msk.f32.gmra.mrb[44].mxu0 %vm282_vm1, %v2005_v49  ;;  %v4019_v15 = vadd.f32 %v1973_v51, %v5141_v42 }
0x143f   :  { %3539 = vmatprep.mubr.msk.f32.mxu0 %vm4290_vm3, %v4287_v44 }
0x1440   :  { %v2006_v16 = vmax.f32 %v4019_v15, 0.0 }
0x1441   :  { %v1978_v59 = vpop.f32.mrb[22].mxu0 }
0x1442   :  { %v3489_v60 = vpop.f32.mrb[23].mxu0  ;;  %3540 = vmatmul.mubr.f32.vlgmr.msra.gmra.mrb[28].mxu0 %v4287_v44  ;;  %v4020_v1 = vadd.f32 %v1978_v59, %v5141_v42 }
0x1443   :  { %3983 = vmatpush3.bf16.msra.mxu0 %v3982_v53  ;;  %3542 = vmatprep.mubr.msk.f32.mxu0 %vm4290_vm3, %v4287_v44 }
0x1444   :  { %3984 = vmatprep.subr.bf16.mxu0 %v4289_v20  ;;  %v2007_v22 = vmax.f32 %v4020_v1, 0.0 }
0x1445   :  { %v1983_v62 = vpop.f32.mrb[24].mxu0 }
0x1446   :  { %v4021_v63 = vadd.f32 %v1983_v62, %v5141_v42  ;;  %v3492_v0 = vpop.f32.mrb[25].mxu0  ;;  %3543 = vmatmul.mubr.f32.gmra.mrb[30].mxu0 %v4287_v44 }
0x1447   :  { %3545 = vmatprep.mubr.msk.f32.mxu0 %vm4290_vm3, %v4287_v44  ;;  %3986 = vmatpush3.bf16.msra.mxu0 %v3985_v61 }
0x1448   :  { %4005 = vmatprep.subr.bf16.mxu0 %v4289_v20  ;;  %v2008_v23 = vmax.f32 %v4021_v63, 0.0 }
0x1449   :  { %v1988_v8 = vpop.f32.mrb[26].mxu0 }
0x144a   :  { %v4022_v55 = vadd.f32 %v1988_v8, %v5141_v42  ;;  %v3495_v9 = vpop.f32.mrb[27].mxu0  ;;  %3546 = vmatmul.mubr.msk.f32.gmra.mrb[32].mxu0 %vm282_vm1, %v5149_v26 }
0x144b   :  { %3548 = vmatprep.mubr.msk.f32.mxu0 %vm4290_vm3, %v4287_v44 }
0x144c   :  { %v2009_v27 = vmax.f32 %v4022_v55, 0.0  ;;  %v2418_v55 = vld [vmem:[%s5419_s4 + $0x5b0] ss:$0 sm:$0xff] }
0x144e   :  { %3549 = vmatmul.mubr.msk.f32.gmra.mrb[34].mxu0 %vm282_vm1, %v5159_v31 }
0x144f   :  { %3551 = vmatprep.mubr.msk.f32.mxu0 %vm4290_vm3, %v4287_v44 }
0x1452   :  { %3552 = vmatmul.mubr.msk.f32.gmra.mrb[36].mxu0 %vm282_vm1, %v2003_v38 }
0x1453   :  { %3554 = vmatprep.mubr.msk.f32.mxu0 %vm4290_vm3, %v4287_v44 }
0x1456   :  { %3555 = vmatmul.mubr.msk.f32.gmra.mrb[38].mxu0 %vm282_vm1, %v2004_v43 }
0x1457   :  { %3557 = vmatprep.mubr.msk.f32.mxu0 %vm4290_vm3, %v4287_v44 }
0x145a   :  { %3558 = vmatmul.mubr.msk.f32.gmra.mrb[40].mxu0 %vm282_vm1, %v2005_v49 }
0x145b   :  { %3560 = vmatprep.mubr.msk.f32.mxu0 %vm4290_vm3, %v4287_v44 }
0x145e   :  { %3561 = vmatmul.mubr.msk.f32.gmra.mrb[42].mxu0 %vm282_vm1, %v2006_v16 }
0x145f   :  { %3563 = vmatprep.mubr.msk.f32.mxu0 %vm4290_vm3, %v4287_v44 }
0x1462   :  { %3564 = vmatmul.mubr.msk.f32.gmra.mrb[44].mxu0 %vm282_vm1, %v2007_v22 }
0x1463   :  { %3574 = vmatprep.mubr.msk.f32.mxu0 %vm4290_vm3, %v4287_v44 }
0x1466   :  { %3575 = vmatmul.mubr.msk.f32.vlgmr.msra.gmra.mrb[28].mxu0 %vm282_vm1, %v5149_v26 }
0x1467   :  { %3577 = vmatprep.mubr.msk.f32.mxu0 %vm4290_vm3, %v4287_v44  ;;  %4007 = vmatpush3.bf16.msra.mxu0 %v4006_v56 }
0x1468   :  { %4008 = vmatprep.subr.bf16.mxu0 %v4289_v20 }
0x146a   :  { %3578 = vmatmul.mubr.msk.f32.gmra.mrb[30].mxu0 %vm282_vm1, %v5159_v31 }
0x146b   :  { %3580 = vmatprep.mubr.msk.f32.mxu0 %vm4290_vm3, %v4287_v44  ;;  %4010 = vmatpush3.bf16.msra.mxu0 %v4009_v57 }
0x146c   :  { %4011 = vmatprep.subr.bf16.mxu0 %v4289_v20 }
0x146e   :  { %3581 = vmatmul.mubr.msk.f32.gmra.mrb[32].mxu0 %vm282_vm1, %v2003_v38 }
0x146f   :  { %3583 = vmatprep.mubr.msk.f32.mxu0 %vm4290_vm3, %v4287_v44  ;;  %4013 = vmatpush3.bf16.msra.mxu0 %v4012_v10 }
0x1472   :  { %3584 = vmatmul.mubr.msk.f32.gmra.mrb[34].mxu0 %vm282_vm1, %v2004_v43 }
0x1473   :  { %3586 = vmatprep.mubr.msk.f32.mxu0 %vm4290_vm3, %v4287_v44 }
0x1476   :  { %3587 = vmatmul.mubr.msk.f32.gmra.mrb[36].mxu0 %vm282_vm1, %v2005_v49 }
0x1477   :  { %3589 = vmatprep.mubr.msk.f32.mxu0 %vm4290_vm3, %v4287_v44 }
0x147a   :  { %3590 = vmatmul.mubr.msk.f32.gmra.mrb[38].mxu0 %vm282_vm1, %v2006_v16 }
0x147b   :  { %3592 = vmatprep.mubr.msk.f32.mxu0 %vm4290_vm3, %v4287_v44 }
0x147e   :  { %3593 = vmatmul.mubr.msk.f32.gmra.mrb[40].mxu0 %vm282_vm1, %v2007_v22 }
0x147f   :  { %3595 = vmatprep.mubr.msk.f32.mxu0 %vm4290_vm3, %v4287_v44 }
0x1482   :  { %3596 = vmatmul.mubr.msk.f32.gmra.mrb[42].mxu0 %vm282_vm1, %v2008_v23 }
0x1483   :  { %3598 = vmatprep.mubr.msk.f32.mxu0 %vm4290_vm3, %v4287_v44 }
0x1486   :  { %3599 = vmatmul.mubr.msk.f32.gmra.mrb[44].mxu0 %vm282_vm1, %v2009_v27 }
0x1487   :  { %3724 = vmatprep.mubr.msk.f32.mxu0 %vm4290_vm3, %v4287_v44 }
0x1539   :  { %v2356_v12 = vpop.f32.mrb[28].mxu0 }
0x153a   :  { %v4023_v13 = vadd.f32 %v2356_v12, %v5276_v11  ;;  %v3576_v14 = vpop.f32.mrb[29].mxu0 }
0x153c   :  { %v2409_v17 = vmax.f32 %v4023_v13, 0.0 }
0x153d   :  { %v2361_v36 = vpop.f32.mrb[30].mxu0 }
0x153e   :  { %v3579_v42 = vpop.f32.mrb[31].mxu0  ;;  %3636 = vmatmul.mubr.msk.f32.gmra.mrb[34].mxu1 %vm2424_vm7, %v2409_v17  ;;  %v4024_v39 = vadd.f32 %v2361_v36, %v5276_v11 }
0x153f   :  { %3648 = vmatprep.mubr.msk.f32.mxu1 %vm4290_vm3, %v4287_v44 }
0x1540   :  { %v2410_v46 = vmax.f32 %v4024_v39, 0.0 }
0x1541   :  { %v2366_v26 = vpop.f32.mrb[32].mxu0 }
0x1542   :  { %v3582_v28 = vpop.f32.mrb[33].mxu0  ;;  %3649 = vmatmul.mubr.f32.vlgmr.msra.gmra.mrb[18].mxu1 %v4287_v44  ;;  %v4025_v47 = vadd.f32 %v2366_v26, %v5276_v11 }
0x1543   :  { %4001 = vmatpush3.bf16.msra.mxu1 %v4000_v21  ;;  %3651 = vmatprep.mubr.msk.f32.mxu1 %vm4290_vm3, %v4287_v44 }
0x1544   :  { %4002 = vmatprep.subr.bf16.mxu1 %v4289_v20  ;;  %v2411_v50 = vmax.f32 %v4025_v47, 0.0 }
0x1545   :  { %v2371_v30 = vpop.f32.mrb[34].mxu0 }
0x1546   :  { %v3585_v31 = vpop.f32.mrb[35].mxu0  ;;  %3652 = vmatmul.mubr.f32.gmra.mrb[20].mxu1 %v4287_v44  ;;  %v4026_v51 = vadd.f32 %v2371_v30, %v5276_v11 }
0x1547   :  { %3654 = vmatprep.mubr.msk.f32.mxu1 %vm4290_vm3, %v4287_v44  ;;  %4004 = vmatpush3.bf16.msra.mxu1 %v4003_v29 }
0x1548   :  { %3683 = vmatprep.subr.mxu1 %v4287_v44  ;;  %v2412_v58 = vmax.f32 %v4026_v51, 0.0 }
0x1549   :  { %v2376_v35 = vpop.f32.mrb[36].mxu0 }
0x154a   :  { %v3588_v37 = vpop.f32.mrb[37].mxu0  ;;  %3655 = vmatmul.mubr.f32.gmra.mrb[22].mxu1 %v4287_v44  ;;  %v4027_v59 = vadd.f32 %v2376_v35, %v5276_v11 }
0x154b   :  { %3657 = vmatprep.mubr.msk.f32.mxu1 %vm4290_vm3, %v4287_v44  ;;  %3684 = vmatpush3.msra.mxu1 %v2689_v34 }
0x154c   :  { %v2413_v60 = vmax.f32 %v4027_v59, 0.0 }
0x154d   :  { %v2381_v20 = vpop.f32.mrb[38].mxu0 }
0x154e   :  { %v3591_v38 = vpop.f32.mrb[39].mxu0  ;;  %3658 = vmatmul.mubr.f32.gmra.mrb[24].mxu1 %v4287_v44  ;;  %v4028_v61 = vadd.f32 %v2381_v20, %v5276_v11  ;;  %v2983_v20 = vand.u32 127, %v651_v32 }
0x154f   :  { %3660 = vmatprep.mubr.msk.f32.mxu1 %vm4290_vm3, %v4287_v44  ;;  %v2836_v38 = vld [vmem:[%s5419_s4 + $0x620] ss:$0 sm:$0xff] }
0x1550   :  { %v2414_v62 = vmax.f32 %v4028_v61, 0.0  ;;  %vm2993_vm9 = vcmp.eq.s32.totalorder %v2983_v20, 127 }
0x1551   :  { %v2386_v40 = vpop.f32.mrb[40].mxu0  ;;  %vm2994_vm10 = vmand %vm2984_vm8, %vm2993_vm9 }
0x1552   :  { %v4029_v41 = vadd.f32 %v2386_v40, %v5276_v11  ;;  %v3594_v43 = vpop.f32.mrb[41].mxu0  ;;  %3661 = vmatmul.mubr.msk.f32.gmra.mrb[26].mxu1 %vm2424_vm7, %v2409_v17 }
0x1553   :  { %3663 = vmatprep.mubr.msk.f32.mxu1 %vm4290_vm3, %v4287_v44 }
0x1554   :  { %v2415_v63 = vmax.f32 %v4029_v41, 0.0 }
0x1555   :  { %v2391_v48 = vpop.f32.mrb[42].mxu0 }
0x1556   :  { %v4030_v49 = vadd.f32 %v2391_v48, %v5276_v11  ;;  %v3597_v45 = vpop.f32.mrb[43].mxu0  ;;  %3664 = vmatmul.mubr.msk.f32.gmra.mrb[28].mxu1 %vm2424_vm7, %v2410_v46 }
0x1557   :  { %3666 = vmatprep.mubr.msk.f32.mxu1 %vm4290_vm3, %v4287_v44 }
0x1558   :  { %v2416_v0 = vmax.f32 %v4030_v49, 0.0 }
0x1559   :  { %v2396_v52 = vpop.f32.mrb[44].mxu0 }
0x155a   :  { %v4031_v53 = vadd.f32 %v2396_v52, %v5276_v11  ;;  %v3600_v54 = vpop.f32.mrb[45].mxu0  ;;  %3667 = vmatmul.mubr.msk.f32.gmra.mrb[30].mxu1 %vm2424_vm7, %v2411_v50 }
0x155b   :  { %3669 = vmatprep.mubr.msk.f32.mxu1 %vm4290_vm3, %v4287_v44 }
0x155c   :  { %v2417_v8 = vmax.f32 %v4031_v53, 0.0 }
0x155e   :  { %3670 = vmatmul.mubr.msk.f32.gmra.mrb[32].mxu1 %vm2424_vm7, %v2412_v58 }
0x155f   :  { %3672 = vmatprep.mubr.msk.f32.mxu1 %vm4290_vm3, %v4287_v44 }
0x1562   :  { %3673 = vmatmul.mubr.msk.f32.gmra.mrb[34].mxu1 %vm2424_vm7, %v2413_v60 }
0x1563   :  { %3685 = vmatprep.mubr.msk.f32.mxu1 %vm4290_vm3, %v4287_v44 }
0x1566   :  { %3686 = vmatmul.mubr.msk.f32.vlgmr.msra.gmra.mrb[18].mxu1 %vm2424_vm7, %v2409_v17 }
0x1567   :  { %3688 = vmatprep.mubr.msk.f32.mxu1 %vm4290_vm3, %v4287_v44 }
0x156a   :  { %3689 = vmatmul.mubr.msk.f32.gmra.mrb[20].mxu1 %vm2424_vm7, %v2410_v46 }
0x156b   :  { %3691 = vmatprep.mubr.msk.f32.mxu1 %vm4290_vm3, %v4287_v44 }
0x156e   :  { %3692 = vmatmul.mubr.msk.f32.gmra.mrb[22].mxu1 %vm2424_vm7, %v2411_v50 }
0x156f   :  { %3694 = vmatprep.mubr.msk.f32.mxu1 %vm4290_vm3, %v4287_v44 }
0x1572   :  { %3695 = vmatmul.mubr.msk.f32.gmra.mrb[24].mxu1 %vm2424_vm7, %v2412_v58 }
0x1573   :  { %3697 = vmatprep.mubr.msk.f32.mxu1 %vm4290_vm3, %v4287_v44 }
0x1576   :  { %3698 = vmatmul.mubr.msk.f32.gmra.mrb[26].mxu1 %vm2424_vm7, %v2413_v60 }
0x1577   :  { %3700 = vmatprep.mubr.msk.f32.mxu1 %vm4290_vm3, %v4287_v44 }
0x157a   :  { %3701 = vmatmul.mubr.msk.f32.gmra.mrb[28].mxu1 %vm2424_vm7, %v2414_v62 }
0x157b   :  { %3703 = vmatprep.mubr.msk.f32.mxu1 %vm4290_vm3, %v4287_v44 }
0x157e   :  { %3704 = vmatmul.mubr.msk.f32.gmra.mrb[30].mxu1 %vm2424_vm7, %v2415_v63 }
0x157f   :  { %3706 = vmatprep.mubr.msk.f32.mxu1 %vm4290_vm3, %v4287_v44 }
0x1582   :  { %3707 = vmatmul.mubr.msk.f32.gmra.mrb[32].mxu1 %vm2424_vm7, %v2416_v0 }
0x1583   :  { %3709 = vmatprep.mubr.msk.f32.mxu1 %vm4290_vm3, %v4287_v44 }
0x1586   :  { %3710 = vmatmul.mubr.msk.f32.gmra.mrb[34].mxu1 %vm2424_vm7, %v2417_v8 }
0x1639   :  { %v2768_v9 = vpop.f32.mrb[18].mxu1 }
0x163a   :  { %v4032_v15 = vadd.f32 %v2768_v9, %v2418_v55  ;;  %v3687_v16 = vpop.f32.mrb[19].mxu1 }
0x163c   :  { %v2821_v1 = vmax.f32 %v4032_v15, 0.0 }
0x163d   :  { %v2773_v22 = vpop.f32.mrb[20].mxu1 }
0x163e   :  { %v4033_v23 = vadd.f32 %v2773_v22, %v2418_v55  ;;  %v3690_v27 = vpop.f32.mrb[21].mxu1  ;;  %3725 = vmatmul.mubr.msk.f32.vlgmr.msra.gmra.mrb[46].mxu0 %vm1602_vm6, %v2821_v1 }
0x163f   :  { %3727 = vmatprep.mubr.msk.f32.mxu0 %vm4290_vm3, %v4287_v44 }
0x1640   :  { %v2822_v2 = vmax.f32 %v4033_v23, 0.0 }
0x1641   :  { %v2778_v3 = vpop.f32.mrb[22].mxu1 }
0x1642   :  { %v4034_v4 = vadd.f32 %v2778_v3, %v2418_v55  ;;  %v3693_v56 = vpop.f32.mrb[23].mxu1  ;;  %3728 = vmatmul.mubr.msk.f32.gmra.mrb[48].mxu0 %vm1602_vm6, %v2822_v2 }
0x1643   :  { %3730 = vmatprep.mubr.msk.f32.mxu0 %vm4290_vm3, %v4287_v44 }
0x1644   :  { %v2823_v5 = vmax.f32 %v4034_v4, 0.0 }
0x1645   :  { %v2783_v57 = vpop.f32.mrb[24].mxu1 }
0x1646   :  { %v4035_v6 = vadd.f32 %v2783_v57, %v2418_v55  ;;  %v3696_v7 = vpop.f32.mrb[25].mxu1  ;;  %3731 = vmatmul.mubr.msk.f32.gmra.mrb[50].mxu0 %vm1602_vm6, %v2823_v5 }
0x1647   :  { %3733 = vmatprep.mubr.msk.f32.mxu0 %vm4290_vm3, %v4287_v44 }
0x1648   :  { %v2824_v10 = vmax.f32 %v4035_v6, 0.0 }
0x1649   :  { %v2788_v11 = vpop.f32.mrb[26].mxu1 }
0x164a   :  { %v4036_v12 = vadd.f32 %v2788_v11, %v2418_v55  ;;  %v3699_v13 = vpop.f32.mrb[27].mxu1  ;;  %3734 = vmatmul.mubr.msk.f32.gmra.mrb[52].mxu0 %vm1602_vm6, %v2824_v10 }
0x164b   :  { %3736 = vmatprep.mubr.msk.f32.mxu0 %vm4290_vm3, %v4287_v44 }
0x164c   :  { %v2825_v14 = vmax.f32 %v4036_v12, 0.0 }
0x164d   :  { %v2793_v17 = vpop.f32.mrb[28].mxu1 }
0x164e   :  { %v4037_v18 = vadd.f32 %v2793_v17, %v2418_v55  ;;  %v3702_v19 = vpop.f32.mrb[29].mxu1  ;;  %3737 = vmatmul.mubr.msk.f32.gmra.mrb[54].mxu0 %vm1602_vm6, %v2825_v14 }
0x164f   :  { %3739 = vmatprep.mubr.msk.f32.mxu0 %vm4290_vm3, %v4287_v44 }
0x1650   :  { %v2826_v36 = vmax.f32 %v4037_v18, 0.0 }
0x1651   :  { %v2798_v42 = vpop.f32.mrb[30].mxu1 }
0x1652   :  { %v4038_v21 = vadd.f32 %v2798_v42, %v2418_v55  ;;  %v3705_v24 = vpop.f32.mrb[31].mxu1  ;;  %3740 = vmatmul.mubr.msk.f32.gmra.mrb[56].mxu0 %vm1602_vm6, %v2826_v36 }
0x1653   :  { %3742 = vmatprep.mubr.msk.f32.mxu0 %vm4290_vm3, %v4287_v44 }
0x1654   :  { %v2827_v25 = vmax.f32 %v4038_v21, 0.0 }
0x1655   :  { %v2803_v26 = vpop.f32.mrb[32].mxu1 }
0x1656   :  { %v4039_v28 = vadd.f32 %v2803_v26, %v2418_v55  ;;  %v3708_v29 = vpop.f32.mrb[33].mxu1  ;;  %3743 = vmatmul.mubr.msk.f32.gmra.mrb[58].mxu0 %vm1602_vm6, %v2827_v25 }
0x1657   :  { %3745 = vmatprep.mubr.msk.f32.mxu0 %vm4290_vm3, %v4287_v44 }
0x1658   :  { %v2828_v30 = vmax.f32 %v4039_v28, 0.0 }
0x1659   :  { %v2808_v31 = vpop.f32.mrb[34].mxu1 }
0x165a   :  { %v4040_v34 = vadd.f32 %v2808_v31, %v2418_v55  ;;  %v3711_v35 = vpop.f32.mrb[35].mxu1  ;;  %3746 = vmatmul.mubr.msk.f32.gmra.mrb[60].mxu0 %vm1602_vm6, %v2828_v30 }
0x165b   :  { %3748 = vmatprep.mubr.msk.f32.mxu0 %vm4290_vm3, %v4287_v44  ;;  %v3003_v44 = vstv %s1501_s18 }
0x165c   :  { %v2829_v37 = vmax.f32 %v4040_v34, 0.0 }
0x165e   :  { %3749 = vmatmul.mubr.msk.f32.gmra.mrb[62].mxu0 %vm1602_vm6, %v2829_v37 }
0x1711   :  { %v2930_v39 = vpop.f32.mrb[46].mxu0 }
0x1712   :  { %v2931_v40 = vadd.f32 %v2930_v39, %v2836_v38  ;;  %v3726_v41 = vpop.f32.mrb[47].mxu0 }
0x1714   :  { %v3004_v43 = vsel %vm2994_vm10, %v3003_v44, %v2931_v40 }
0x1715   :  { %3013 = vst [vmem:[%s5424_s5] sm:$0xff] %v3004_v43  ;;  %v2935_v32 = vpop.f32.mrb[48].mxu0 }
0x1716   :  { %v2936_v46 = vadd.f32 %v2935_v32, %v2836_v38  ;;  %v3729_v47 = vpop.f32.mrb[49].mxu0 }
0x1718   :  { %3014 = vst [vmem:[%s5424_s5 + $0x8] sm:$0xff] %v2936_v46 }
0x1719   :  { %v2940_v33 = vpop.f32.mrb[50].mxu0 }
0x171a   :  { %v2941_v48 = vadd.f32 %v2940_v33, %v2836_v38  ;;  %v3732_v49 = vpop.f32.mrb[51].mxu0 }
0x171c   :  { %3015 = vst [vmem:[%s5424_s5 + $0x10] sm:$0xff] %v2941_v48 }
0x171d   :  { %v2945_v45 = vpop.f32.mrb[52].mxu0 }
0x171e   :  { %v2946_v50 = vadd.f32 %v2945_v45, %v2836_v38  ;;  %v3735_v51 = vpop.f32.mrb[53].mxu0 }
0x1720   :  { %3016 = vst [vmem:[%s5424_s5 + $0x18] sm:$0xff] %v2946_v50 }
0x1721   :  { %v2950_v52 = vpop.f32.mrb[54].mxu0 }
0x1722   :  { %v2951_v53 = vadd.f32 %v2950_v52, %v2836_v38  ;;  %v3738_v54 = vpop.f32.mrb[55].mxu0 }
0x1724   :  { %3017 = vst [vmem:[%s5424_s5 + $0x20] sm:$0xff] %v2951_v53 }
0x1725   :  { %v2955_v58 = vpop.f32.mrb[56].mxu0 }
0x1726   :  { %v2956_v59 = vadd.f32 %v2955_v58, %v2836_v38  ;;  %v3741_v60 = vpop.f32.mrb[57].mxu0 }
0x1728   :  { %3018 = vst [vmem:[%s5424_s5 + $0x28] sm:$0xff] %v2956_v59 }
0x1729   :  { %v2960_v61 = vpop.f32.mrb[58].mxu0 }
0x172a   :  { %v2961_v62 = vadd.f32 %v2960_v61, %v2836_v38  ;;  %v3744_v63 = vpop.f32.mrb[59].mxu0 }
0x172c   :  { %3019 = vst [vmem:[%s5424_s5 + $0x30] sm:$0xff] %v2961_v62 }
0x172d   :  { %v2965_v0 = vpop.f32.mrb[60].mxu0 }
0x172e   :  { %v2966_v8 = vadd.f32 %v2965_v0, %v2836_v38  ;;  %v3747_v55 = vpop.f32.mrb[61].mxu0 }
0x1730   :  { %3020 = vst [vmem:[%s5424_s5 + $0x38] sm:$0xff] %v2966_v8 }
0x1731   :  { %v2970_v9 = vpop.f32.mrb[62].mxu0 }
0x1732   :  { %v2971_v15 = vadd.f32 %v2970_v9, %v2836_v38  ;;  %v3750_v16 = vpop.f32.mrb[63].mxu0 }
0x1734   :  { %3021 = vst [vmem:[%s5424_s5 + $0x40] sm:$0xff] %v2971_v15 }

</bundles_post_ra>
